<compile_context>
chip_gen: v7x
topology: tpu7x:2x2x1
jax: 0.10.0
libtpu: 0.0.40
codegen_flags: <defaults>
</compile_context>

<pallas_src>
import jax
import jax.numpy as jnp
from jax import lax
from jax.experimental import pallas as pl


def _make_scale_mul_kernel(fold: int, hw: int):
    """Kernel over x:(R, fold*hw), s:(R, fold) -> o[r, l] = x[r, l] * s[r, l // hw]."""

    def kernel(x_ref, s_ref, o_ref):
        x = x_ref[...]                                   # (R, fold*hw)
        s = s_ref[...]                                   # (R, fold)
        if fold == 1:
            o_ref[...] = x * s                           # (R,1) broadcast over lanes
            return
        # Expand s to (R, fold*hw): lanes [j*hw, (j+1)*hw) take s[:, j].
        # Exact (compare/select only), cheap VPU/XLU work.
        lane = lax.broadcasted_iota(jnp.int32, x.shape, 1)
        s_exp = jnp.broadcast_to(s[:, 0:1], x.shape)
        for j in range(1, fold):
            s_exp = jnp.where(lane >= j * hw, s[:, j:j + 1], s_exp)
        o_ref[...] = x * s_exp

    return kernel


def channel_scale_mul(x, s, *, lane_fold: int = 8):
    """Computes x * s with x:(N, C, H, W) and s:(N, C, 1, 1). N must be 1."""
    n, c, h, w = x.shape
    assert n == 1 and s.shape == (1, c, 1, 1)  # TODO(synk): batch>1 not needed by the module
    hw = h * w

    # Fold `lane_fold` channels into the lane axis for a lane-dense last dim.
    fold = lane_fold if (lane_fold > 1 and c % lane_fold == 0) else 1
    rows = c // fold
    lanes = fold * hw

    x2 = x.reshape(rows, lanes)   # free, row-major-contiguous reshape
    s2 = s.reshape(rows, fold)    # free reshape

    kernel = _make_scale_mul_kernel(fold, hw)

    out2 = pl.pallas_call(
        kernel,
        out_shape=jax.ShapeDtypeStruct((rows, lanes), x.dtype),
        # Single grid step: whole array is one block (~0.5 MB per buffer in
        # VMEM, far under the scoped-VMEM limit on v5e/v6e/v7x).
        grid=(1,),
        in_specs=[
            pl.BlockSpec((rows, lanes), lambda i: (0, 0)),
            pl.BlockSpec((rows, fold), lambda i: (0, 0)),
        ],
        out_specs=pl.BlockSpec((rows, lanes), lambda i: (0, 0)),
    )(x2, s2)

    return out2.reshape(n, c, h, w)


if __name__ == "__main__":
    key = jax.random.PRNGKey(0)
    k1, k2 = jax.random.split(key)

    # Shapes implied by the module: x582 (1, 2064, 7, 7), x587 (1, 2064, 1, 1)
    x582 = jax.random.normal(k1, (1, 2064, 7, 7), dtype=jnp.float32)
    x587 = jax.random.normal(k2, (1, 2064, 1, 1), dtype=jnp.float32)

    out = channel_scale_mul(x582, x587)
    out = jax.block_until_ready(out)

    ref = x582 * x587
    assert out.shape == ref.shape and out.dtype == ref.dtype
    assert jnp.allclose(out, ref, atol=1e-6, rtol=1e-6)

    print("KERNEL_OK")
</pallas_src>

<mosaic_0001>
module attributes {stable_mosaic.version = 11 : i64} {
  func.func @kernel(%arg0: i32, %arg1: memref<258x392xf32, #tpu.memory_space<vmem>>, %arg2: memref<258x8xf32, #tpu.memory_space<vmem>>, %arg3: memref<258x392xf32, #tpu.memory_space<vmem>>) attributes {dimension_semantics = [#tpu.dimension_semantics<arbitrary>], iteration_bounds = array<i64: 1>, scalar_prefetch = 0 : i64, scratch_operands = 0 : i64, tpu.core_type = #tpu.core_type<tc>, window_params = [{pipeline_mode = #tpu.pipeline_mode<synchronous>, transform_indices = @transform_0, window_bounds = array<i64: 258, 392>}, {pipeline_mode = #tpu.pipeline_mode<synchronous>, transform_indices = @transform_1, window_bounds = array<i64: 258, 8>}, {pipeline_mode = #tpu.pipeline_mode<synchronous>, transform_indices = @transform_2, window_bounds = array<i64: 258, 392>}]} {
    %c0 = arith.constant 0 : index
    %c0_0 = arith.constant 0 : index
    %0 = vector.load %arg1[%c0, %c0_0] : memref<258x392xf32, #tpu.memory_space<vmem>>, vector<258x392xf32>
    %c0_1 = arith.constant 0 : index
    %c0_2 = arith.constant 0 : index
    %1 = vector.load %arg2[%c0_1, %c0_2] : memref<258x8xf32, #tpu.memory_space<vmem>>, vector<258x8xf32>
    %2 = tpu.iota {dimensions = array<i32: 1>} : vector<258x392xi32>
    %3 = vector.extract_strided_slice %1 {offsets = [0, 0], sizes = [258, 1], strides = [1, 1]} : vector<258x8xf32> to vector<258x1xf32>
    %4 = vector.shape_cast %3 : vector<258x1xf32> to vector<258x1xf32>
    %5 = vector.broadcast %4 : vector<258x1xf32> to vector<258x392xf32>
    %c49_i32 = arith.constant 49 : i32
    %6 = vector.broadcast %c49_i32 : i32 to vector<258x392xi32>
    %7 = arith.cmpi sge, %2, %6 : vector<258x392xi32>
    %8 = vector.extract_strided_slice %1 {offsets = [0, 1], sizes = [258, 1], strides = [1, 1]} : vector<258x8xf32> to vector<258x1xf32>
    %9 = vector.shape_cast %8 : vector<258x1xf32> to vector<258x1xf32>
    %10 = vector.broadcast %9 : vector<258x1xf32> to vector<258x392xf32>
    %11 = arith.select %7, %10, %5 : vector<258x392xi1>, vector<258x392xf32>
    %c98_i32 = arith.constant 98 : i32
    %12 = vector.broadcast %c98_i32 : i32 to vector<258x392xi32>
    %13 = arith.cmpi sge, %2, %12 : vector<258x392xi32>
    %14 = vector.extract_strided_slice %1 {offsets = [0, 2], sizes = [258, 1], strides = [1, 1]} : vector<258x8xf32> to vector<258x1xf32>
    %15 = vector.shape_cast %14 : vector<258x1xf32> to vector<258x1xf32>
    %16 = vector.broadcast %15 : vector<258x1xf32> to vector<258x392xf32>
    %17 = arith.select %13, %16, %11 : vector<258x392xi1>, vector<258x392xf32>
    %c147_i32 = arith.constant 147 : i32
    %18 = vector.broadcast %c147_i32 : i32 to vector<258x392xi32>
    %19 = arith.cmpi sge, %2, %18 : vector<258x392xi32>
    %20 = vector.extract_strided_slice %1 {offsets = [0, 3], sizes = [258, 1], strides = [1, 1]} : vector<258x8xf32> to vector<258x1xf32>
    %21 = vector.shape_cast %20 : vector<258x1xf32> to vector<258x1xf32>
    %22 = vector.broadcast %21 : vector<258x1xf32> to vector<258x392xf32>
    %23 = arith.select %19, %22, %17 : vector<258x392xi1>, vector<258x392xf32>
    %c196_i32 = arith.constant 196 : i32
    %24 = vector.broadcast %c196_i32 : i32 to vector<258x392xi32>
    %25 = arith.cmpi sge, %2, %24 : vector<258x392xi32>
    %26 = vector.extract_strided_slice %1 {offsets = [0, 4], sizes = [258, 1], strides = [1, 1]} : vector<258x8xf32> to vector<258x1xf32>
    %27 = vector.shape_cast %26 : vector<258x1xf32> to vector<258x1xf32>
    %28 = vector.broadcast %27 : vector<258x1xf32> to vector<258x392xf32>
    %29 = arith.select %25, %28, %23 : vector<258x392xi1>, vector<258x392xf32>
    %c245_i32 = arith.constant 245 : i32
    %30 = vector.broadcast %c245_i32 : i32 to vector<258x392xi32>
    %31 = arith.cmpi sge, %2, %30 : vector<258x392xi32>
    %32 = vector.extract_strided_slice %1 {offsets = [0, 5], sizes = [258, 1], strides = [1, 1]} : vector<258x8xf32> to vector<258x1xf32>
    %33 = vector.shape_cast %32 : vector<258x1xf32> to vector<258x1xf32>
    %34 = vector.broadcast %33 : vector<258x1xf32> to vector<258x392xf32>
    %35 = arith.select %31, %34, %29 : vector<258x392xi1>, vector<258x392xf32>
    %c294_i32 = arith.constant 294 : i32
    %36 = vector.broadcast %c294_i32 : i32 to vector<258x392xi32>
    %37 = arith.cmpi sge, %2, %36 : vector<258x392xi32>
    %38 = vector.extract_strided_slice %1 {offsets = [0, 6], sizes = [258, 1], strides = [1, 1]} : vector<258x8xf32> to vector<258x1xf32>
    %39 = vector.shape_cast %38 : vector<258x1xf32> to vector<258x1xf32>
    %40 = vector.broadcast %39 : vector<258x1xf32> to vector<258x392xf32>
    %41 = arith.select %37, %40, %35 : vector<258x392xi1>, vector<258x392xf32>
    %c343_i32 = arith.constant 343 : i32
    %42 = vector.broadcast %c343_i32 : i32 to vector<258x392xi32>
    %43 = arith.cmpi sge, %2, %42 : vector<258x392xi32>
    %44 = vector.extract_strided_slice %1 {offsets = [0, 7], sizes = [258, 1], strides = [1, 1]} : vector<258x8xf32> to vector<258x1xf32>
    %45 = vector.shape_cast %44 : vector<258x1xf32> to vector<258x1xf32>
    %46 = vector.broadcast %45 : vector<258x1xf32> to vector<258x392xf32>
    %47 = arith.select %43, %46, %41 : vector<258x392xi1>, vector<258x392xf32>
    %48 = arith.mulf %0, %47 : vector<258x392xf32>
    %c0_3 = arith.constant 0 : index
    %c0_4 = arith.constant 0 : index
    %49 = vector.load %arg3[%c0_3, %c0_4] : memref<258x392xf32, #tpu.memory_space<vmem>>, vector<258x392xf32>
    tpu.vector_store %arg3[%c0_3, %c0_4], %48 {strides = array<i32>} : memref<258x392xf32, #tpu.memory_space<vmem>>, vector<258x392xf32>,
    return
  }
  func.func @transform_0(%arg0: i32) -> (i32, i32) {
    %c0_i32 = arith.constant 0 : i32
    %c0_i32_0 = arith.constant 0 : i32
    %c0_i32_1 = arith.constant 0 : i32
    return %c0_i32, %c0_i32_0 : i32, i32
  }
  func.func @transform_1(%arg0: i32) -> (i32, i32) {
    %c0_i32 = arith.constant 0 : i32
    %c0_i32_0 = arith.constant 0 : i32
    %c0_i32_1 = arith.constant 0 : i32
    return %c0_i32, %c0_i32_0 : i32, i32
  }
  func.func @transform_2(%arg0: i32) -> (i32, i32) {
    %c0_i32 = arith.constant 0 : i32
    %c0_i32_0 = arith.constant 0 : i32
    %c0_i32_1 = arith.constant 0 : i32
    return %c0_i32, %c0_i32_0 : i32, i32
  }
}

</mosaic_0001>

<bundles_post_ra>
// kernel: tpu_custom_call.1
= control target key start
LH: loop header
LB: loop body
LE: loop exit
PB: predicated region body
PF: predicated region fallthrough
CT: control target
= control target key end

     0   :  { %7 = vsyncpa [#allocation3], 0  ;;  %s4550_s0 = inlined_call_operand.hbm [shape: f32[258,392], index: 0, kind: input, shape index: {}]   ;;  %s4551_s1 = inlined_call_operand.vmem [shape: f32[258,8], index: 1, kind: input, shape index: {}]   ;;  %s4552_s2 = inlined_call_operand.hbm [shape: f32[258,392], index: 2, kind: output, shape index: {}]  }
   0x1   :  { %8 = vsyncpa [#allocation4], 0  ;;  %s2629_s9 = smov [#allocation2]   ;;  %s2581_s13 = scalar_lea.hbm %s4550_s0, 16896 }
   0x2   :  { %s14_s10 = sshll.u32 %s2629_s9, 4  ;;  %p2582_p0 = scmp.ne.s32.totalorder %s4550_s0, %s2581_s13  ;;  %s15_s10 = int_to_ptr.vmem [resolvable:$true] %s14_s10 }
   0x3   :  { %p2585_p1 = scmp.lt.u32.totalorder %s2581_s13, %s4550_s0 }
   0x5   :  { %p2587_p2 = pnand %p2585_p1, %p2582_p0 }
   0x7   :  { %2590 = shalt.err (!%p2587_p2)
}
   0x8   :  { %s2591_s18 = scalar_lea.vmem %s15_s10, 16896  ;;  %p2596_p4 = scmp.lt.s32.totalorder %s15_s10, %s15_s10 }
   0x9   :  { %p2592_p3 = scmp.ne.s32.totalorder %s15_s10, %s2591_s18  ;;  %p2597_p5 = scmp.lt.s32.totalorder %s2591_s18, %s2591_s18 }
   0xb   :  { %p2598_p6 = por %p2597_p5, %p2596_p4 }
   0xd   :  { %p2599_p7 = pnand %p2598_p6, %p2592_p3 }
   0xf   :  { %2602 = shalt.err (!%p2599_p7)
}
  0x10   :  { %s2630_s19 = smov 512   ;;  %s2631_s20 = smov 32  }
  0x11   :  { %20 = dma.hbm_to_vmem [thread:$0]  %s4550_s0, 16896, %s15_s10, [#allocation3], %s2630_s19, %s2630_s19, %s2631_s20  }
  0x12   :  { %2625 = dma.done.wait [#allocation3], 16896  }
  0x13   :  { %2626 = vsyncadd [#allocation3], 4294950400  ;;  %v2632_v0 = vmov 0   ;;  %v2674_v1 = vld [vmem:[%s4551_s1 + $0x10] sm:$0xff]  ;;  %v2679_v2 = vld [vmem:[%s4551_s1] sm:$0xff]  ;;  %v2633_v34 = vmov 1  }
  0x14   :  { %2533 = vset.pattern.permute.xlu1 %v2632_v0  ;;  %2532 = vset.pattern.permute.xlu0 %v2632_v0  ;;  %v2686_v3 = vld [vmem:[%s4551_s1 + $0x18] sm:$0xff]  ;;  %v2691_v4 = vld [vmem:[%s4551_s1 + $0x8] sm:$0xff]  ;;  %v2703_v6 = vld [vmem:[%s4551_s1 + $0x20] sm:$0xff]  ;;  %v2634_v39 = vmov 2   ;;  %vm2372_vm7 = vcmask 64512   ;;  %vm2501_vm8 = vcmask 58368  }
  0x15   :  { %208 = vperm.xlu1 %2533, %v2674_v1   ;;  %198 = vperm.xlu0 %2532, %v2679_v2   ;;  %v2698_v5 = vld [vmem:[%s4551_s1 + $0x28] sm:$0xff]  ;;  %v2710_v7 = vld [vmem:[%s4551_s1 + $0x38] sm:$0xff]  ;;  %v2715_v8 = vld [vmem:[%s4551_s1 + $0x30] sm:$0xff] }
  0x16   :  { %4625 = vst [vmem:[#allocation8_spill] sm:$0xff] %v2710_v7  ;;  %v2722_v9 = vld [vmem:[%s4551_s1 + $0x48] sm:$0xff]  ;;  %v2727_v10 = vld [vmem:[%s4551_s1 + $0x40] sm:$0xff]  ;;  %v2734_v11 = vld [vmem:[%s4551_s1 + $0x58] sm:$0xff] }
  0x17   :  { %4626 = vst [vmem:[#allocation9_spill] sm:$0xff] %v2722_v9  ;;  %4627 = vst [vmem:[#allocation10_spill] sm:$0xff] %v2734_v11  ;;  %v2739_v12 = vld [vmem:[%s4551_s1 + $0x50] sm:$0xff]  ;;  %v2746_v13 = vld [vmem:[%s4551_s1 + $0x68] sm:$0xff] }
  0x18   :  { %4628 = vst [vmem:[#allocation11_spill] sm:$0xff] %v2746_v13  ;;  %v2751_v14 = vld [vmem:[%s4551_s1 + $0x60] sm:$0xff]  ;;  %v2758_v15 = vld [vmem:[%s4551_s1 + $0x78] sm:$0xff]  ;;  %v2763_v16 = vld [vmem:[%s4551_s1 + $0x70] sm:$0xff] }
  0x19   :  { %213 = vperm.xlu1 %2533, %v2686_v3   ;;  %203 = vperm.xlu0 %2532, %v2691_v4   ;;  %4629 = vst [vmem:[#allocation12_spill] sm:$0xff] %v2758_v15  ;;  %v2770_v17 = vld [vmem:[%s4551_s1 + $0x88] sm:$0xff]  ;;  %v2775_v18 = vld [vmem:[%s4551_s1 + $0x80] sm:$0xff]  ;;  %v2782_v19 = vld [vmem:[%s4551_s1 + $0x98] sm:$0xff] }
  0x1a   :  { %4630 = vst [vmem:[#allocation13_spill] sm:$0xff] %v2770_v17  ;;  %4631 = vst [vmem:[#allocation14_spill] sm:$0xff] %v2782_v19  ;;  %v2787_v20 = vld [vmem:[%s4551_s1 + $0x90] sm:$0xff]  ;;  %v2794_v21 = vld [vmem:[%s4551_s1 + $0xa8] sm:$0xff] }
  0x1b   :  { %4632 = vst [vmem:[#allocation15_spill] sm:$0xff] %v2794_v21  ;;  %v2799_v22 = vld [vmem:[%s4551_s1 + $0xa0] sm:$0xff]  ;;  %v2806_v23 = vld [vmem:[%s4551_s1 + $0xb8] sm:$0xff]  ;;  %v2811_v24 = vld [vmem:[%s4551_s1 + $0xb0] sm:$0xff] }
  0x1c   :  { %4633 = vst [vmem:[#allocation16_spill] sm:$0xff] %v2806_v23  ;;  %4634 = vst [vmem:[#allocation17_spill] sm:$0xff] %v2811_v24  ;;  %v2818_v25 = vld [vmem:[%s4551_s1 + $0xc8] sm:$0xff]  ;;  %v2823_v26 = vld [vmem:[%s4551_s1 + $0xc0] sm:$0xff] }
  0x1d   :  { %223 = vperm.xlu1 %2533, %v2698_v5   ;;  %218 = vperm.xlu0 %2532, %v2703_v6   ;;  %4635 = vst [vmem:[#allocation18_spill] sm:$0xff] %v2818_v25  ;;  %v2830_v27 = vld [vmem:[%s4551_s1 + $0xd8] sm:$0xff]  ;;  %v2835_v28 = vld [vmem:[%s4551_s1 + $0xd0] sm:$0xff]  ;;  %v2842_v29 = vld [vmem:[%s4551_s1 + $0xe8] sm:$0xff] }
  0x1e   :  { %4636 = vst [vmem:[#allocation19_spill] sm:$0xff] %v2830_v27  ;;  %v2847_v30 = vld [vmem:[%s4551_s1 + $0xe0] sm:$0xff]  ;;  %v2854_v31 = vld [vmem:[%s4551_s1 + $0xf8] sm:$0xff]  ;;  %v2859_v32 = vld [vmem:[%s4551_s1 + $0xf0] sm:$0xff] }
  0x1f   :  { %4637 = vst [vmem:[#allocation20_spill] sm:$0xff] %v2859_v32  ;;  %v2866_v33 = vld [vmem:[%s4551_s1 + $0x100] sm:$0x3] }
  0x20   :  { %4638 = vst [vmem:[#allocation21_spill] sm:$0xff] %v2866_v33 }
  0x21   :  { %233 = vperm.xlu1 %2533, %v2710_v7   ;;  %228 = vperm.xlu0 %2532, %v2715_v8  }
  0x25   :  { %243 = vperm.xlu1 %2533, %v2722_v9   ;;  %238 = vperm.xlu0 %2532, %v2727_v10  }
  0x29   :  { %253 = vperm.xlu1 %2533, %v2734_v11   ;;  %248 = vperm.xlu0 %2532, %v2739_v12  }
  0x2d   :  { %263 = vperm.xlu1 %2533, %v2746_v13   ;;  %258 = vperm.xlu0 %2532, %v2751_v14  }
  0x31   :  { %273 = vperm.xlu1 %2533, %v2758_v15   ;;  %268 = vperm.xlu0 %2532, %v2763_v16  }
  0x35   :  { %283 = vperm.xlu1 %2533, %v2770_v17   ;;  %278 = vperm.xlu0 %2532, %v2775_v18  }
  0x39   :  { %293 = vperm.xlu1 %2533, %v2782_v19   ;;  %288 = vperm.xlu0 %2532, %v2787_v20  }
  0x3d   :  { %303 = vperm.xlu1 %2533, %v2794_v21   ;;  %298 = vperm.xlu0 %2532, %v2799_v22  }
  0x41   :  { %313 = vperm.xlu1 %2533, %v2806_v23   ;;  %308 = vperm.xlu0 %2532, %v2811_v24  }
  0x45   :  { %323 = vperm.xlu1 %2533, %v2818_v25   ;;  %318 = vperm.xlu0 %2532, %v2823_v26  }
  0x49   :  { %333 = vperm.xlu1 %2533, %v2830_v27   ;;  %328 = vperm.xlu0 %2532, %v2835_v28  }
  0x4d   :  { %343 = vperm.xlu1 %2533, %v2842_v29   ;;  %338 = vperm.xlu0 %2532, %v2847_v30  }
  0x51   :  { %353 = vperm.xlu1 %2533, %v2854_v31   ;;  %348 = vperm.xlu0 %2532, %v2859_v32  }
  0x55   :  { %2534 = vset.pattern.permute.xlu1 %v2633_v34  ;;  %358 = vperm.xlu0 %2532, %v2866_v33  }
  0x56   :  { %366 = vperm.xlu1 %2534, %v2679_v2  }
  0x59   :  { %2535 = vset.pattern.permute.xlu0 %v2633_v34 }
  0x5a   :  { %374 = vperm.xlu1 %2534, %v2674_v1   ;;  %370 = vperm.xlu0 %2535, %v2691_v4  }
  0x5e   :  { %378 = vperm.xlu1 %2534, %v2686_v3   ;;  %382 = vperm.xlu0 %2535, %v2703_v6  }
  0x62   :  { %386 = vperm.xlu1 %2534, %v2698_v5   ;;  %390 = vperm.xlu0 %2535, %v2715_v8  }
  0x66   :  { %394 = vperm.xlu1 %2534, %v2710_v7   ;;  %398 = vperm.xlu0 %2535, %v2727_v10  }
  0x6a   :  { %402 = vperm.xlu1 %2534, %v2722_v9   ;;  %406 = vperm.xlu0 %2535, %v2739_v12  }
  0x6e   :  { %410 = vperm.xlu1 %2534, %v2734_v11   ;;  %414 = vperm.xlu0 %2535, %v2751_v14  }
  0x72   :  { %418 = vperm.xlu1 %2534, %v2746_v13   ;;  %422 = vperm.xlu0 %2535, %v2763_v16  }
  0x76   :  { %426 = vperm.xlu1 %2534, %v2758_v15   ;;  %430 = vperm.xlu0 %2535, %v2775_v18  }
  0x7a   :  { %434 = vperm.xlu1 %2534, %v2770_v17   ;;  %438 = vperm.xlu0 %2535, %v2787_v20  }
  0x7e   :  { %442 = vperm.xlu1 %2534, %v2782_v19   ;;  %446 = vperm.xlu0 %2535, %v2799_v22  }
  0x82   :  { %450 = vperm.xlu1 %2534, %v2794_v21   ;;  %454 = vperm.xlu0 %2535, %v2811_v24  }
  0x86   :  { %458 = vperm.xlu1 %2534, %v2806_v23   ;;  %462 = vperm.xlu0 %2535, %v2823_v26  }
  0x8a   :  { %466 = vperm.xlu1 %2534, %v2818_v25   ;;  %470 = vperm.xlu0 %2535, %v2835_v28  }
  0x8e   :  { %474 = vperm.xlu1 %2534, %v2830_v27   ;;  %478 = vperm.xlu0 %2535, %v2847_v30  }
  0x92   :  { %482 = vperm.xlu1 %2534, %v2842_v29   ;;  %486 = vperm.xlu0 %2535, %v2859_v32  }
  0x94   :  { %v2900_v35 = vpop.permute.xlu1 %208  ;;  %v2902_v36 = vpop.permute.xlu0 %198 }
  0x96   :  { %490 = vperm.xlu1 %2534, %v2854_v31   ;;  %494 = vperm.xlu0 %2535, %v2866_v33  }
  0x98   :  { %v2906_v37 = vpop.permute.xlu1 %213  ;;  %v2908_v38 = vpop.permute.xlu0 %203 }
  0x9a   :  { %2536 = vset.pattern.permute.xlu1 %v2634_v39  ;;  %2537 = vset.pattern.permute.xlu0 %v2634_v39 }
  0x9b   :  { %634 = vperm.xlu1 %2536, %v2679_v2   ;;  %638 = vperm.xlu0 %2537, %v2691_v4  }
  0x9c   :  { %v2912_v40 = vpop.permute.xlu1 %223  ;;  %v2914_v41 = vpop.permute.xlu0 %218 }
  0x9f   :  { %642 = vperm.xlu1 %2536, %v2674_v1   ;;  %650 = vperm.xlu0 %2537, %v2703_v6  }
  0xa0   :  { %v2918_v42 = vpop.permute.xlu1 %233  ;;  %v2920_v43 = vpop.permute.xlu0 %228 }
  0xa3   :  { %646 = vperm.xlu1 %2536, %v2686_v3   ;;  %658 = vperm.xlu0 %2537, %v2715_v8  }
  0xa4   :  { %v2924_v44 = vpop.permute.xlu1 %243  ;;  %v2926_v45 = vpop.permute.xlu0 %238 }
  0xa7   :  { %654 = vperm.xlu1 %2536, %v2698_v5   ;;  %666 = vperm.xlu0 %2537, %v2727_v10  }
  0xa8   :  { %v2930_v46 = vpop.permute.xlu1 %253  ;;  %v2932_v47 = vpop.permute.xlu0 %248 }
  0xab   :  { %662 = vperm.xlu1 %2536, %v2710_v7   ;;  %674 = vperm.xlu0 %2537, %v2739_v12  }
  0xac   :  { %v2936_v48 = vpop.permute.xlu1 %263  ;;  %v2938_v49 = vpop.permute.xlu0 %258 }
  0xad   :  { %4639 = vst [vmem:[#allocation22_spill] sm:$0xff] %v2936_v48 }
  0xaf   :  { %670 = vperm.xlu1 %2536, %v2722_v9   ;;  %682 = vperm.xlu0 %2537, %v2751_v14  }
  0xb0   :  { %v2942_v50 = vpop.permute.xlu1 %273  ;;  %v2944_v51 = vpop.permute.xlu0 %268 }
  0xb1   :  { %4640 = vst [vmem:[#allocation23_spill] sm:$0xff] %v2942_v50  ;;  %4641 = vst [vmem:[#allocation24_spill] sm:$0xff] %v2944_v51 }
  0xb3   :  { %678 = vperm.xlu1 %2536, %v2734_v11   ;;  %690 = vperm.xlu0 %2537, %v2763_v16  }
  0xb4   :  { %v2948_v52 = vpop.permute.xlu1 %283  ;;  %v2950_v53 = vpop.permute.xlu0 %278 }
  0xb5   :  { %4642 = vst [vmem:[#allocation25_spill] sm:$0xff] %v2948_v52  ;;  %4643 = vst [vmem:[#allocation26_spill] sm:$0xff] %v2950_v53 }
  0xb7   :  { %686 = vperm.xlu1 %2536, %v2746_v13   ;;  %698 = vperm.xlu0 %2537, %v2775_v18  }
  0xb8   :  { %v2954_v54 = vpop.permute.xlu1 %293  ;;  %v2956_v55 = vpop.permute.xlu0 %288 }
  0xb9   :  { %4644 = vst [vmem:[#allocation27_spill] sm:$0xff] %v2954_v54  ;;  %4645 = vst [vmem:[#allocation28_spill] sm:$0xff] %v2956_v55 }
  0xbb   :  { %694 = vperm.xlu1 %2536, %v2758_v15   ;;  %706 = vperm.xlu0 %2537, %v2787_v20  }
  0xbc   :  { %v2960_v56 = vpop.permute.xlu1 %303  ;;  %v2962_v57 = vpop.permute.xlu0 %298 }
  0xbd   :  { %4646 = vst [vmem:[#allocation29_spill] sm:$0xff] %v2960_v56  ;;  %4647 = vst [vmem:[#allocation30_spill] sm:$0xff] %v2962_v57 }
  0xbf   :  { %702 = vperm.xlu1 %2536, %v2770_v17   ;;  %714 = vperm.xlu0 %2537, %v2799_v22  }
  0xc0   :  { %v2966_v58 = vpop.permute.xlu1 %313  ;;  %v2968_v59 = vpop.permute.xlu0 %308 }
  0xc1   :  { %4648 = vst [vmem:[#allocation31_spill] sm:$0xff] %v2966_v58  ;;  %4649 = vst [vmem:[#allocation32_spill] sm:$0xff] %v2968_v59 }
  0xc3   :  { %710 = vperm.xlu1 %2536, %v2782_v19   ;;  %722 = vperm.xlu0 %2537, %v2811_v24  }
  0xc4   :  { %v2972_v60 = vpop.permute.xlu1 %323  ;;  %v2974_v61 = vpop.permute.xlu0 %318 }
  0xc5   :  { %4650 = vst [vmem:[#allocation33_spill] sm:$0xff] %v2972_v60  ;;  %4651 = vst [vmem:[#allocation34_spill] sm:$0xff] %v2974_v61 }
  0xc7   :  { %718 = vperm.xlu1 %2536, %v2794_v21   ;;  %730 = vperm.xlu0 %2537, %v2823_v26  }
  0xc8   :  { %v2978_v62 = vpop.permute.xlu1 %333  ;;  %v2980_v63 = vpop.permute.xlu0 %328 }
  0xc9   :  { %4652 = vst [vmem:[#allocation35_spill] sm:$0xff] %v2978_v62  ;;  %4653 = vst [vmem:[#allocation36_spill] sm:$0xff] %v2980_v63 }
  0xcb   :  { %726 = vperm.xlu1 %2536, %v2806_v23   ;;  %738 = vperm.xlu0 %2537, %v2835_v28  }
  0xcc   :  { %v2984_v0 = vpop.permute.xlu1 %343  ;;  %v2986_v34 = vpop.permute.xlu0 %338 }
  0xcd   :  { %4654 = vst [vmem:[#allocation37_spill] sm:$0xff] %v2984_v0  ;;  %4655 = vst [vmem:[#allocation38_spill] sm:$0xff] %v2986_v34 }
  0xcf   :  { %734 = vperm.xlu1 %2536, %v2818_v25   ;;  %746 = vperm.xlu0 %2537, %v2847_v30  }
  0xd0   :  { %v2990_v39 = vpop.permute.xlu1 %353  ;;  %v2992_v60 = vpop.permute.xlu0 %348 }
  0xd1   :  { %4656 = vst [vmem:[#allocation39_spill] sm:$0xff] %v2990_v39  ;;  %4657 = vst [vmem:[#allocation40_spill] sm:$0xff] %v2992_v60  ;;  %v2635_v39 = vmov 3  }
  0xd3   :  { %742 = vperm.xlu1 %2536, %v2830_v27   ;;  %754 = vperm.xlu0 %2537, %v2859_v32  }
  0xd4   :  { %v2996_v62 = vpop.permute.xlu0 %358 }
  0xd5   :  { %4658 = vst [vmem:[#allocation41_spill] sm:$0xff] %v2996_v62  ;;  %v2998_v63 = vpop.permute.xlu1 %366 }
  0xd7   :  { %750 = vperm.xlu1 %2536, %v2842_v29   ;;  %762 = vperm.xlu0 %2537, %v2866_v33  }
  0xd9   :  { %v3002_v0 = vpop.permute.xlu1 %374  ;;  %v3004_v34 = vpop.permute.xlu0 %370 }
  0xdb   :  { %758 = vperm.xlu1 %2536, %v2854_v31   ;;  %2539 = vset.pattern.permute.xlu0 %v2635_v39 }
  0xdc   :  { %906 = vperm.xlu0 %2539, %v2691_v4  }
  0xdd   :  { %v3008_v60 = vpop.permute.xlu1 %378  ;;  %v3010_v58 = vpop.permute.xlu0 %382 }
  0xdf   :  { %2538 = vset.pattern.permute.xlu1 %v2635_v39 }
  0xe0   :  { %902 = vperm.xlu1 %2538, %v2679_v2   ;;  %918 = vperm.xlu0 %2539, %v2703_v6  }
  0xe1   :  { %v3014_v62 = vpop.permute.xlu1 %386  ;;  %v3016_v61 = vpop.permute.xlu0 %390 }
  0xe4   :  { %910 = vperm.xlu1 %2538, %v2674_v1   ;;  %926 = vperm.xlu0 %2539, %v2715_v8  }
  0xe5   :  { %v3020_v56 = vpop.permute.xlu1 %394  ;;  %v3022_v59 = vpop.permute.xlu0 %398 }
  0xe8   :  { %914 = vperm.xlu1 %2538, %v2686_v3   ;;  %934 = vperm.xlu0 %2539, %v2727_v10  }
  0xe9   :  { %v3026_v39 = vpop.permute.xlu1 %402  ;;  %v3028_v54 = vpop.permute.xlu0 %406 }
  0xec   :  { %922 = vperm.xlu1 %2538, %v2698_v5   ;;  %942 = vperm.xlu0 %2539, %v2739_v12  }
  0xed   :  { %v3032_v57 = vpop.permute.xlu1 %410  ;;  %v3034_v52 = vpop.permute.xlu0 %414 }
  0xf0   :  { %930 = vperm.xlu1 %2538, %v2710_v7   ;;  %950 = vperm.xlu0 %2539, %v2751_v14  }
  0xf1   :  { %v3038_v55 = vpop.permute.xlu1 %418  ;;  %v3040_v50 = vpop.permute.xlu0 %422 }
  0xf2   :  { %4659 = vst [vmem:[#allocation42_spill] sm:$0xff] %v3038_v55 }
  0xf4   :  { %938 = vperm.xlu1 %2538, %v2722_v9   ;;  %958 = vperm.xlu0 %2539, %v2763_v16  }
  0xf5   :  { %v3044_v53 = vpop.permute.xlu1 %426  ;;  %v3046_v48 = vpop.permute.xlu0 %430 }
  0xf6   :  { %4660 = vst [vmem:[#allocation43_spill] sm:$0xff] %v3044_v53 }
  0xf8   :  { %946 = vperm.xlu1 %2538, %v2734_v11   ;;  %966 = vperm.xlu0 %2539, %v2775_v18  }
  0xf9   :  { %v3050_v51 = vpop.permute.xlu1 %434  ;;  %v3052_v7 = vpop.permute.xlu0 %438 }
  0xfa   :  { %4661 = vst [vmem:[#allocation44_spill] sm:$0xff] %v3050_v51 }
  0xfc   :  { %954 = vperm.xlu1 %2538, %v2746_v13   ;;  %974 = vperm.xlu0 %2539, %v2787_v20  }
  0xfd   :  { %v3056_v55 = vpop.permute.xlu1 %442  ;;  %v3058_v9 = vpop.permute.xlu0 %446 }
  0xfe   :  { %4662 = vst [vmem:[#allocation45_spill] sm:$0xff] %v3056_v55 }
 0x100   :  { %962 = vperm.xlu1 %2538, %v2758_v15   ;;  %982 = vperm.xlu0 %2539, %v2799_v22  }
 0x101   :  { %v3062_v53 = vpop.permute.xlu1 %450  ;;  %v3064_v11 = vpop.permute.xlu0 %454 }
 0x102   :  { %4663 = vst [vmem:[#allocation46_spill] sm:$0xff] %v3062_v53 }
 0x104   :  { %970 = vperm.xlu1 %2538, %v2770_v17   ;;  %990 = vperm.xlu0 %2539, %v2811_v24   ;;  %v191_v24 = vlaneseq }
 0x105   :  { %v3068_v51 = vpop.permute.xlu1 %458  ;;  %v3070_v13 = vpop.permute.xlu0 %462 }
 0x106   :  { %4664 = vst [vmem:[#allocation47_spill] sm:$0xff] %v3068_v51 }
 0x108   :  { %978 = vperm.xlu1 %2538, %v2782_v19   ;;  %998 = vperm.xlu0 %2539, %v2823_v26  }
 0x109   :  { %v3074_v55 = vpop.permute.xlu1 %466  ;;  %v3076_v15 = vpop.permute.xlu0 %470 }
 0x10a   :  { %4665 = vst [vmem:[#allocation48_spill] sm:$0xff] %v3074_v55  ;;  %v3090_v55 = vand.u32 127, %v191_v24 }
 0x10c   :  { %986 = vperm.xlu1 %2538, %v2794_v21   ;;  %1006 = vperm.xlu0 %2539, %v2835_v28   ;;  %4669 = vst [vmem:[#allocation52_spill] sm:$0xff] %v3090_v55  ;;  %vm361_vm0 = vcmp.ge.s32.totalorder %v3090_v55, 49  ;;  %vm629_vm1 = vcmp.ge.s32.totalorder %v3090_v55, 98 }
 0x10d   :  { %v3080_v53 = vpop.permute.xlu1 %474  ;;  %v3082_v17 = vpop.permute.xlu0 %478  ;;  %v497_v24 = vsel %vm361_vm0, %v2998_v63, %v2902_v36  ;;  %v2636_v36 = vmov 4   ;;  %v42_v63 = vld [vmem:[#allocation2 + $0x80] sm:$0xff] }
 0x10e   :  { %4666 = vst [vmem:[#allocation49_spill] sm:$0xff] %v3080_v53 }
 0x110   :  { %994 = vperm.xlu1 %2538, %v2806_v23   ;;  %1014 = vperm.xlu0 %2539, %v2847_v30   ;;  %v30_v23 = vld [vmem:[#allocation2 + $0x20] sm:$0xff] }
 0x111   :  { %v3086_v19 = vpop.permute.xlu1 %482  ;;  %v3088_v51 = vpop.permute.xlu0 %486 }
 0x112   :  { %4667 = vst [vmem:[#allocation50_spill] sm:$0xff] %v3086_v19  ;;  %4668 = vst [vmem:[#allocation51_spill] sm:$0xff] %v3088_v51  ;;  %v26_v19 = vld [vmem:[#allocation2] sm:$0xff] }
 0x114   :  { %1002 = vperm.xlu1 %2538, %v2818_v25   ;;  %1022 = vperm.xlu0 %2539, %v2859_v32  }
 0x115   :  { %v3094_v21 = vpop.permute.xlu1 %490  ;;  %v3096_v53 = vpop.permute.xlu0 %494 }
 0x116   :  { %4670 = vst [vmem:[#allocation53_spill] sm:$0xff] %v3094_v21  ;;  %4671 = vst [vmem:[#allocation54_spill] sm:$0xff] %v3096_v53  ;;  %v501_v21 = vsel %vm361_vm0, %v3004_v34, %v2908_v38  ;;  %v34_v38 = vld [vmem:[#allocation2 + $0x40] sm:$0xff]  ;;  %v505_v34 = vsel %vm361_vm0, %v3002_v0, %v2900_v35 }
 0x118   :  { %1010 = vperm.xlu1 %2538, %v2830_v27   ;;  %1030 = vperm.xlu0 %2539, %v2866_v33  }
 0x11a   :  { %v3110_v25 = vpop.permute.xlu1 %634  ;;  %v3112_v53 = vpop.permute.xlu0 %638 }
 0x11b   :  { %v765_v27 = vsel %vm629_vm1, %v3110_v25, %v497_v24  ;;  %v769_v33 = vsel %vm629_vm1, %v3112_v53, %v501_v21  ;;  %v513_v21 = vsel %vm361_vm0, %v3010_v58, %v2914_v41  ;;  %v50_v41 = vld [vmem:[#allocation2 + $0xc0] sm:$0xff]  ;;  %v521_v58 = vsel %vm361_vm0, %v3016_v61, %v2920_v43 }
 0x11c   :  { %v2237_v32 = vmul.f32 %v765_v27, %v26_v19  ;;  %v2241_v51 = vmul.f32 %v769_v33, %v30_v23  ;;  %1018 = vperm.xlu1 %2538, %v2842_v29   ;;  %2541 = vset.pattern.permute.xlu0 %v2636_v36  ;;  %v46_v43 = vld [vmem:[#allocation2 + $0xa0] sm:$0xff] }
 0x11d   :  { %1174 = vperm.xlu0 %2541, %v2691_v4   ;;  %v58_v61 = vld [vmem:[#allocation2 + $0x100] sm:$0xff] }
 0x11e   :  { %2369 = vst [vmem:[#allocation5] sm:$0xff] %v2237_v32  ;;  %2374 = vst [vmem:[#allocation5 + $0x20] sm:$0xff] %v2241_v51  ;;  %v3130_v19 = vpop.permute.xlu1 %642  ;;  %v3132_v23 = vpop.permute.xlu0 %650  ;;  %v38_v32 = vld [vmem:[#allocation2 + $0x60] sm:$0xff]  ;;  %v509_v51 = vsel %vm361_vm0, %v3008_v60, %v2906_v37 }
 0x11f   :  { %v773_v27 = vsel %vm629_vm1, %v3130_v19, %v505_v34  ;;  %v781_v33 = vsel %vm629_vm1, %v3132_v23, %v513_v21  ;;  %v517_v21 = vsel %vm361_vm0, %v3014_v62, %v2912_v40 }
 0x120   :  { %v2245_v35 = vmul.f32 %v773_v27, %v34_v38  ;;  %v2253_v0 = vmul.f32 %v781_v33, %v42_v63  ;;  %1026 = vperm.xlu1 %2538, %v2854_v31   ;;  %v529_v27 = vsel %vm361_vm0, %v3022_v59, %v2926_v45  ;;  %v54_v45 = vld [vmem:[#allocation2 + $0xe0] sm:$0xff] }
 0x121   :  { %1186 = vperm.xlu0 %2541, %v2703_v6   ;;  %v66_v59 = vld [vmem:[#allocation2 + $0x140] sm:$0xff] }
 0x122   :  { %2378 = vst [vmem:[#allocation5 + $0x40] sm:$0xff] %v2245_v35  ;;  %2386 = vst [vmem:[#allocation5 + $0x80] sm:$0xff] %v2253_v0  ;;  %v3150_v24 = vpop.permute.xlu1 %646  ;;  %v3152_v38 = vpop.permute.xlu0 %658 }
 0x123   :  { %v777_v63 = vsel %vm629_vm1, %v3150_v24, %v509_v51  ;;  %v789_v34 = vsel %vm629_vm1, %v3152_v38, %v521_v58 }
 0x124   :  { %v2249_v37 = vmul.f32 %v777_v63, %v38_v32  ;;  %v2261_v60 = vmul.f32 %v789_v34, %v50_v41  ;;  %2540 = vset.pattern.permute.xlu1 %v2636_v36  ;;  %v525_v32 = vsel %vm361_vm0, %v3020_v56, %v2918_v42  ;;  %v537_v41 = vsel %vm361_vm0, %v3028_v54, %v2932_v47  ;;  %v62_v47 = vld [vmem:[#allocation2 + $0x120] sm:$0xff] }
 0x125   :  { %1170 = vperm.xlu1 %2540, %v2679_v2   ;;  %1194 = vperm.xlu0 %2541, %v2715_v8   ;;  %v74_v54 = vld [vmem:[#allocation2 + $0x180] sm:$0xff] }
 0x126   :  { %2382 = vst [vmem:[#allocation5 + $0x60] sm:$0xff] %v2249_v37  ;;  %2394 = vst [vmem:[#allocation5 + $0xc0] sm:$0xff] %v2261_v60  ;;  %v3170_v33 = vpop.permute.xlu1 %654  ;;  %v3172_v36 = vpop.permute.xlu0 %666  ;;  %v533_v37 = vsel %vm361_vm0, %v3026_v39, %v2924_v44  ;;  %v545_v60 = vsel %vm361_vm0, %v3034_v52, %v2938_v49  ;;  %v70_v49 = vld [vmem:[#allocation2 + $0x160] sm:$0xff] }
 0x127   :  { %v785_v35 = vsel %vm629_vm1, %v3170_v33, %v517_v21  ;;  %v797_v0 = vsel %vm629_vm1, %v3172_v36, %v529_v27  ;;  %v82_v52 = vld [vmem:[#allocation2 + $0x1c0] sm:$0xff] }
 0x128   :  { %v2257_v40 = vmul.f32 %v785_v35, %v46_v43  ;;  %v2269_v62 = vmul.f32 %v797_v0, %v58_v61  ;;  %v541_v35 = vsel %vm361_vm0, %v3032_v57, %v2930_v46  ;;  %v4672_v0 = vld [vmem:[#allocation24_spill] sm:$0xff] }
 0x129   :  { %1178 = vperm.xlu1 %2540, %v2674_v1   ;;  %1202 = vperm.xlu0 %2541, %v2727_v10  }
 0x12a   :  { %2390 = vst [vmem:[#allocation5 + $0xa0] sm:$0xff] %v2257_v40  ;;  %2402 = vst [vmem:[#allocation5 + $0x100] sm:$0xff] %v2269_v62  ;;  %v3190_v51 = vpop.permute.xlu1 %662  ;;  %v3192_v58 = vpop.permute.xlu0 %674  ;;  %v553_v40 = vsel %vm361_vm0, %v3040_v50, %v4672_v0  ;;  %v78_v50 = vld [vmem:[#allocation2 + $0x1a0] sm:$0xff]  ;;  %v4681_v0 = vld [vmem:[#allocation43_spill] sm:$0xff] }
 0x12b   :  { %v793_v63 = vsel %vm629_vm1, %v3190_v51, %v525_v32  ;;  %v805_v34 = vsel %vm629_vm1, %v3192_v58, %v537_v41  ;;  %v4674_v41 = vld [vmem:[#allocation8_spill] sm:$0xff] }
 0x12c   :  { %v2265_v42 = vmul.f32 %v793_v63, %v54_v45  ;;  %v2277_v56 = vmul.f32 %v805_v34, %v66_v59  ;;  %v90_v63 = vld [vmem:[#allocation2 + $0x200] sm:$0xff]  ;;  %v4675_v34 = vld [vmem:[#allocation22_spill] sm:$0xff] }
 0x12d   :  { %1182 = vperm.xlu1 %2540, %v2686_v3   ;;  %1210 = vperm.xlu0 %2541, %v2739_v12  }
 0x12e   :  { %2398 = vst [vmem:[#allocation5 + $0xe0] sm:$0xff] %v2265_v42  ;;  %2410 = vst [vmem:[#allocation5 + $0x140] sm:$0xff] %v2277_v56  ;;  %v3210_v43 = vpop.permute.xlu1 %670  ;;  %v3212_v61 = vpop.permute.xlu0 %682  ;;  %v4676_v42 = vld [vmem:[#allocation42_spill] sm:$0xff] }
 0x12f   :  { %v801_v21 = vsel %vm629_vm1, %v3210_v43, %v533_v37  ;;  %v813_v27 = vsel %vm629_vm1, %v3212_v61, %v545_v60  ;;  %v549_v56 = vsel %vm361_vm0, %v4676_v42, %v4675_v34 }
 0x130   :  { %v2273_v44 = vmul.f32 %v801_v21, %v62_v47  ;;  %v2285_v39 = vmul.f32 %v813_v27, %v74_v54  ;;  %v4677_v47 = vld [vmem:[#allocation26_spill] sm:$0xff] }
 0x131   :  { %1190 = vperm.xlu1 %2540, %v2698_v5   ;;  %1218 = vperm.xlu0 %2541, %v2751_v14   ;;  %v561_v54 = vsel %vm361_vm0, %v3046_v48, %v4677_v47  ;;  %v86_v48 = vld [vmem:[#allocation2 + $0x1e0] sm:$0xff] }
 0x132   :  { %2406 = vst [vmem:[#allocation5 + $0x120] sm:$0xff] %v2273_v44  ;;  %2418 = vst [vmem:[#allocation5 + $0x180] sm:$0xff] %v2285_v39  ;;  %v3230_v62 = vpop.permute.xlu1 %678  ;;  %v3232_v45 = vpop.permute.xlu0 %690  ;;  %v106_v47 = vld [vmem:[#allocation2 + $0x280] sm:$0xff] }
 0x133   :  { %4673 = vst [vmem:[#allocation24_spill] sm:$0xff] %v3230_v62  ;;  %v809_v59 = vsel %vm629_vm1, %v3230_v62, %v541_v35  ;;  %v821_v32 = vsel %vm629_vm1, %v3232_v45, %v553_v40  ;;  %v4680_v35 = vld [vmem:[#allocation23_spill] sm:$0xff] }
 0x134   :  { %v2281_v46 = vmul.f32 %v809_v59, %v70_v49  ;;  %v2293_v57 = vmul.f32 %v821_v32, %v82_v52  ;;  %v4679_v49 = vld [vmem:[#allocation9_spill] sm:$0xff]  ;;  %v98_v52 = vld [vmem:[#allocation2 + $0x240] sm:$0xff]  ;;  %v557_v40 = vsel %vm361_vm0, %v4681_v0, %v4680_v35 }
 0x135   :  { %1198 = vperm.xlu1 %2540, %v4674_v41   ;;  %1226 = vperm.xlu0 %2541, %v2763_v16   ;;  %v4682_v59 = vld [vmem:[#allocation28_spill] sm:$0xff] }
 0x136   :  { %2414 = vst [vmem:[#allocation5 + $0x160] sm:$0xff] %v2281_v46  ;;  %2426 = vst [vmem:[#allocation5 + $0x1c0] sm:$0xff] %v2293_v57  ;;  %v3250_v37 = vpop.permute.xlu1 %686  ;;  %v3252_v60 = vpop.permute.xlu0 %698  ;;  %v569_v32 = vsel %vm361_vm0, %v3052_v7, %v4682_v59  ;;  %v94_v7 = vld [vmem:[#allocation2 + $0x220] sm:$0xff] }
 0x137   :  { %4678 = vst [vmem:[#allocation8_spill] sm:$0xff] %v3250_v37  ;;  %v817_v21 = vsel %vm629_vm1, %v3250_v37, %v549_v56  ;;  %v829_v27 = vsel %vm629_vm1, %v3252_v60, %v561_v54  ;;  %v4684_v56 = vld [vmem:[#allocation10_spill] sm:$0xff]  ;;  %v4685_v54 = vld [vmem:[#allocation25_spill] sm:$0xff] }
 0x138   :  { %v2289_v44 = vmul.f32 %v817_v21, %v78_v50  ;;  %v2301_v39 = vmul.f32 %v829_v27, %v90_v63  ;;  %v4686_v21 = vld [vmem:[#allocation44_spill] sm:$0xff]  ;;  %v4726_v37 = vld [vmem:[#allocation41_spill] sm:$0xff] }
 0x139   :  { %1206 = vperm.xlu1 %2540, %v4679_v49   ;;  %1234 = vperm.xlu0 %2541, %v2775_v18   ;;  %v565_v27 = vsel %vm361_vm0, %v4686_v21, %v4685_v54  ;;  %v4693_v54 = vld [vmem:[#allocation32_spill] sm:$0xff] }
 0x13a   :  { %2422 = vst [vmem:[#allocation5 + $0x1a0] sm:$0xff] %v2289_v44  ;;  %2434 = vst [vmem:[#allocation5 + $0x200] sm:$0xff] %v2301_v39  ;;  %v3270_v46 = vpop.permute.xlu1 %694  ;;  %v3272_v57 = vpop.permute.xlu0 %706  ;;  %v4687_v44 = vld [vmem:[#allocation30_spill] sm:$0xff]  ;;  %v585_v21 = vsel %vm361_vm0, %v3064_v11, %v4693_v54  ;;  %v110_v11 = vld [vmem:[#allocation2 + $0x2a0] sm:$0xff] }
 0x13b   :  { %4683 = vst [vmem:[#allocation22_spill] sm:$0xff] %v3270_v46  ;;  %v825_v50 = vsel %vm629_vm1, %v3270_v46, %v557_v40  ;;  %v837_v63 = vsel %vm629_vm1, %v3272_v57, %v569_v32  ;;  %v577_v39 = vsel %vm361_vm0, %v3058_v9, %v4687_v44  ;;  %v4690_v32 = vld [vmem:[#allocation11_spill] sm:$0xff]  ;;  %v102_v9 = vld [vmem:[#allocation2 + $0x260] sm:$0xff] }
 0x13c   :  { %v2297_v34 = vmul.f32 %v825_v50, %v86_v48  ;;  %v2309_v42 = vmul.f32 %v837_v63, %v98_v52  ;;  %v114_v50 = vld [vmem:[#allocation2 + $0x2c0] sm:$0xff]  ;;  %v4691_v63 = vld [vmem:[#allocation27_spill] sm:$0xff] }
 0x13d   :  { %1214 = vperm.xlu1 %2540, %v4684_v56   ;;  %1242 = vperm.xlu0 %2541, %v2787_v20   ;;  %v4706_v46 = vld [vmem:[#allocation36_spill] sm:$0xff] }
 0x13e   :  { %2430 = vst [vmem:[#allocation5 + $0x1e0] sm:$0xff] %v2297_v34  ;;  %2442 = vst [vmem:[#allocation5 + $0x240] sm:$0xff] %v2309_v42  ;;  %v3290_v48 = vpop.permute.xlu1 %702  ;;  %v3292_v52 = vpop.permute.xlu0 %714  ;;  %v4692_v34 = vld [vmem:[#allocation45_spill] sm:$0xff] }
 0x13f   :  { %4688 = vst [vmem:[#allocation42_spill] sm:$0xff] %v3290_v48  ;;  %4689 = vst [vmem:[#allocation26_spill] sm:$0xff] %v3292_v52  ;;  %v833_v35 = vsel %vm629_vm1, %v3290_v48, %v565_v27  ;;  %v845_v0 = vsel %vm629_vm1, %v3292_v52, %v577_v39  ;;  %v573_v42 = vsel %vm361_vm0, %v4692_v34, %v4691_v63  ;;  %v4697_v63 = vld [vmem:[#allocation17_spill] sm:$0xff]  ;;  %v4699_v34 = vld [vmem:[#allocation46_spill] sm:$0xff] }
 0x140   :  { %v2305_v40 = vmul.f32 %v833_v35, %v94_v7  ;;  %v2317_v59 = vmul.f32 %v845_v0, %v106_v47  ;;  %v4696_v0 = vld [vmem:[#allocation12_spill] sm:$0xff]  ;;  %v4700_v48 = vld [vmem:[#allocation34_spill] sm:$0xff] }
 0x141   :  { %1222 = vperm.xlu1 %2540, %v4690_v32   ;;  %1250 = vperm.xlu0 %2541, %v2799_v22   ;;  %v4727_v52 = vld [vmem:[#allocation54_spill] sm:$0xff] }
 0x142   :  { %2438 = vst [vmem:[#allocation5 + $0x220] sm:$0xff] %v2305_v40  ;;  %2450 = vst [vmem:[#allocation5 + $0x280] sm:$0xff] %v2317_v59  ;;  %v3310_v7 = vpop.permute.xlu1 %710  ;;  %v3312_v47 = vpop.permute.xlu0 %722  ;;  %v122_v40 = vld [vmem:[#allocation2 + $0x300] sm:$0xff]  ;;  %v4698_v59 = vld [vmem:[#allocation29_spill] sm:$0xff] }
 0x143   :  { %4694 = vst [vmem:[#allocation9_spill] sm:$0xff] %v3310_v7  ;;  %4695 = vst [vmem:[#allocation23_spill] sm:$0xff] %v3312_v47  ;;  %v841_v27 = vsel %vm629_vm1, %v3310_v7, %v573_v42  ;;  %v853_v44 = vsel %vm629_vm1, %v3312_v47, %v585_v21  ;;  %v581_v54 = vsel %vm361_vm0, %v4699_v34, %v4698_v59  ;;  %v4703_v34 = vld [vmem:[#allocation13_spill] sm:$0xff]  ;;  %v4719_v47 = vld [vmem:[#allocation51_spill] sm:$0xff] }
 0x144   :  { %v2313_v39 = vmul.f32 %v841_v27, %v102_v9  ;;  %v2325_v35 = vmul.f32 %v853_v44, %v114_v50  ;;  %v593_v42 = vsel %vm361_vm0, %v3070_v13, %v4700_v48  ;;  %v118_v13 = vld [vmem:[#allocation2 + $0x2e0] sm:$0xff] }
 0x145   :  { %1230 = vperm.xlu1 %2540, %v4696_v0   ;;  %1258 = vperm.xlu0 %2541, %v4697_v63   ;;  %v130_v48 = vld [vmem:[#allocation2 + $0x340] sm:$0xff] }
 0x146   :  { %2446 = vst [vmem:[#allocation5 + $0x260] sm:$0xff] %v2313_v39  ;;  %2458 = vst [vmem:[#allocation5 + $0x2c0] sm:$0xff] %v2325_v35  ;;  %v3330_v9 = vpop.permute.xlu1 %718  ;;  %v3332_v50 = vpop.permute.xlu0 %730  ;;  %v4704_v39 = vld [vmem:[#allocation31_spill] sm:$0xff] }
 0x147   :  { %4701 = vst [vmem:[#allocation43_spill] sm:$0xff] %v3330_v9  ;;  %4702 = vst [vmem:[#allocation28_spill] sm:$0xff] %v3332_v50  ;;  %v849_v21 = vsel %vm629_vm1, %v3330_v9, %v581_v54  ;;  %v861_v27 = vsel %vm629_vm1, %v3332_v50, %v593_v42  ;;  %v4705_v35 = vld [vmem:[#allocation47_spill] sm:$0xff]  ;;  %v601_v54 = vsel %vm361_vm0, %v3076_v15, %v4706_v46  ;;  %v126_v15 = vld [vmem:[#allocation2 + $0x320] sm:$0xff] }
 0x148   :  { %v2321_v44 = vmul.f32 %v849_v21, %v110_v11  ;;  %v2333_v59 = vmul.f32 %v861_v27, %v122_v40  ;;  %v589_v7 = vsel %vm361_vm0, %v4705_v35, %v4704_v39  ;;  %v4709_v35 = vld [vmem:[#allocation14_spill] sm:$0xff]  ;;  %v138_v46 = vld [vmem:[#allocation2 + $0x380] sm:$0xff] }
 0x149   :  { %1238 = vperm.xlu1 %2540, %v4703_v34   ;;  %1266 = vperm.xlu0 %2541, %v2823_v26   ;;  %v4712_v50 = vld [vmem:[#allocation38_spill] sm:$0xff] }
 0x14a   :  { %2454 = vst [vmem:[#allocation5 + $0x2a0] sm:$0xff] %v2321_v44  ;;  %2466 = vst [vmem:[#allocation5 + $0x300] sm:$0xff] %v2333_v59  ;;  %v3350_v11 = vpop.permute.xlu1 %726  ;;  %v3352_v40 = vpop.permute.xlu0 %738  ;;  %v4710_v44 = vld [vmem:[#allocation33_spill] sm:$0xff]  ;;  %v4711_v59 = vld [vmem:[#allocation48_spill] sm:$0xff] }
 0x14b   :  { %4707 = vst [vmem:[#allocation10_spill] sm:$0xff] %v3350_v11  ;;  %4708 = vst [vmem:[#allocation25_spill] sm:$0xff] %v3352_v40  ;;  %v857_v42 = vsel %vm629_vm1, %v3350_v11, %v589_v7  ;;  %v869_v21 = vsel %vm629_vm1, %v3352_v40, %v601_v54  ;;  %v597_v9 = vsel %vm361_vm0, %v4711_v59, %v4710_v44  ;;  %v4715_v59 = vld [vmem:[#allocation15_spill] sm:$0xff]  ;;  %v4718_v40 = vld [vmem:[#allocation40_spill] sm:$0xff] }
 0x14c   :  { %v2329_v27 = vmul.f32 %v857_v42, %v118_v13  ;;  %v2341_v39 = vmul.f32 %v869_v21, %v130_v48  ;;  %v609_v7 = vsel %vm361_vm0, %v3082_v17, %v4712_v50  ;;  %v134_v17 = vld [vmem:[#allocation2 + $0x360] sm:$0xff] }
 0x14d   :  { %1246 = vperm.xlu1 %2540, %v4709_v35   ;;  %1274 = vperm.xlu0 %2541, %v2835_v28   ;;  %v146_v50 = vld [vmem:[#allocation2 + $0x3c0] sm:$0xff] }
 0x14e   :  { %2462 = vst [vmem:[#allocation5 + $0x2e0] sm:$0xff] %v2329_v27  ;;  %2474 = vst [vmem:[#allocation5 + $0x340] sm:$0xff] %v2341_v39  ;;  %v3370_v13 = vpop.permute.xlu1 %734  ;;  %v3372_v48 = vpop.permute.xlu0 %746  ;;  %v4716_v27 = vld [vmem:[#allocation35_spill] sm:$0xff]  ;;  %v4717_v39 = vld [vmem:[#allocation49_spill] sm:$0xff] }
 0x14f   :  { %4713 = vst [vmem:[#allocation44_spill] sm:$0xff] %v3370_v13  ;;  %4714 = vst [vmem:[#allocation30_spill] sm:$0xff] %v3372_v48  ;;  %v865_v54 = vsel %vm629_vm1, %v3370_v13, %v597_v9  ;;  %v877_v42 = vsel %vm629_vm1, %v3372_v48, %v609_v7  ;;  %v605_v11 = vsel %vm361_vm0, %v4717_v39, %v4716_v27  ;;  %v4722_v39 = vld [vmem:[#allocation16_spill] sm:$0xff] }
 0x150   :  { %v2337_v21 = vmul.f32 %v865_v54, %v126_v15  ;;  %v2349_v44 = vmul.f32 %v877_v42, %v138_v46  ;;  %v617_v9 = vsel %vm361_vm0, %v4719_v47, %v4718_v40  ;;  %v4723_v13 = vld [vmem:[#allocation20_spill] sm:$0xff] }
 0x151   :  { %1254 = vperm.xlu1 %2540, %v4715_v59   ;;  %1282 = vperm.xlu0 %2541, %v2847_v30   ;;  %v142_v47 = vld [vmem:[#allocation2 + $0x3a0] sm:$0xff] }
 0x152   :  { %2470 = vst [vmem:[#allocation5 + $0x320] sm:$0xff] %v2337_v21  ;;  %2482 = vst [vmem:[#allocation5 + $0x380] sm:$0xff] %v2349_v44  ;;  %v3390_v15 = vpop.permute.xlu1 %742  ;;  %v3392_v46 = vpop.permute.xlu0 %754  ;;  %v154_v40 = vld [vmem:[#allocation2 + $0x400] sm:$0x3]  ;;  %v4724_v21 = vld [vmem:[#allocation37_spill] sm:$0xff] }
 0x153   :  { %4720 = vst [vmem:[#allocation11_spill] sm:$0xff] %v3390_v15  ;;  %4721 = vst [vmem:[#allocation27_spill] sm:$0xff] %v3392_v46  ;;  %v873_v7 = vsel %vm629_vm1, %v3390_v15, %v605_v11  ;;  %v885_v54 = vsel %vm629_vm1, %v3392_v46, %v617_v9  ;;  %v4725_v44 = vld [vmem:[#allocation50_spill] sm:$0xff]  ;;  %v625_v11 = vsel %vm361_vm0, %v4727_v52, %v4726_v37  ;;  %v4731_v15 = vld [vmem:[#allocation21_spill] sm:$0xff] }
 0x154   :  { %v2345_v42 = vmul.f32 %v873_v7, %v134_v17  ;;  %v2357_v27 = vmul.f32 %v885_v54, %v146_v50  ;;  %v613_v48 = vsel %vm361_vm0, %v4725_v44, %v4724_v21  ;;  %v4730_v44 = vld [vmem:[#allocation18_spill] sm:$0xff]  ;;  %v150_v37 = vld [vmem:[#allocation2 + $0x3e0] sm:$0xff]  ;;  %v4732_v52 = vld [vmem:[#allocation39_spill] sm:$0xff] }
 0x155   :  { %1262 = vperm.xlu1 %2540, %v4722_v39   ;;  %1290 = vperm.xlu0 %2541, %v4723_v13  }
 0x156   :  { %2478 = vst [vmem:[#allocation5 + $0x360] sm:$0xff] %v2345_v42  ;;  %2490 = vst [vmem:[#allocation5 + $0x3c0] sm:$0xff] %v2357_v27  ;;  %v3410_v17 = vpop.permute.xlu1 %750  ;;  %v3412_v50 = vpop.permute.xlu0 %762  ;;  %v4733_v42 = vld [vmem:[#allocation53_spill] sm:$0xff] }
 0x157   :  { %4728 = vst [vmem:[#allocation45_spill] sm:$0xff] %v3410_v17  ;;  %4729 = vst [vmem:[#allocation32_spill] sm:$0xff] %v3412_v50  ;;  %v881_v9 = vsel %vm629_vm1, %v3410_v17, %v613_v48  ;;  %v893_v7 = vsel %vm629_vm1, %v3412_v50, %v625_v11  ;;  %v621_v27 = vsel %vm361_vm0, %v4733_v42, %v4732_v52  ;;  %v4735_v11 = vld [vmem:[#allocation19_spill] sm:$0xff]  ;;  %v3576_v17 = vld [vmem:[%s4551_s1] sm:$0xff] }
 0x158   :  { %v2353_v54 = vmul.f32 %v881_v9, %v142_v47  ;;  %v2365_v21 = vmul.f32 %v893_v7, %v154_v40  ;;  %v2637_v9 = vmov 5  }
 0x159   :  { %1270 = vperm.xlu1 %2540, %v4730_v44   ;;  %1298 = vperm.xlu0 %2541, %v4731_v15  }
 0x15a   :  { %2486 = vst [vmem:[#allocation5 + $0x3a0] sm:$0xff] %v2353_v54  ;;  %2498 = vst [vmem:[#allocation5 + $0x400] sm:$0x3] %v2365_v21  ;;  %v3426_v46 = vpop.permute.xlu1 %758 }
 0x15b   :  { %4734 = vst [vmem:[#allocation12_spill] sm:$0xff] %v3426_v46  ;;  %v889_v48 = vsel %vm629_vm1, %v3426_v46, %v621_v27  ;;  %v3431_v47 = vpop.permute.xlu0 %906  ;;  %v3566_v46 = vld [vmem:[%s4551_s1 + $0x40] sm:$0xff] }
 0x15c   :  { %v2361_v40 = vmul.f32 %v889_v48, %v150_v37 }
 0x15d   :  { %1278 = vperm.xlu1 %2540, %v4735_v11   ;;  %2543 = vset.pattern.permute.xlu0 %v2637_v9 }
 0x15e   :  { %2494 = vst [vmem:[#allocation5 + $0x3e0] sm:$0xff] %v2361_v40  ;;  %1442 = vperm.xlu0 %2543, %v2691_v4  }
 0x15f   :  { %v3435_v7 = vpop.permute.xlu1 %902  ;;  %v3437_v54 = vpop.permute.xlu0 %918 }
 0x161   :  { %1286 = vperm.xlu1 %2540, %v2842_v29  }
 0x162   :  { %1454 = vperm.xlu0 %2543, %v2703_v6  }
 0x163   :  { %v3441_v21 = vpop.permute.xlu1 %910  ;;  %v3443_v52 = vpop.permute.xlu0 %926 }
 0x165   :  { %1294 = vperm.xlu1 %2540, %v2854_v31  }
 0x166   :  { %1462 = vperm.xlu0 %2543, %v2715_v8  }
 0x167   :  { %v3447_v37 = vpop.permute.xlu1 %914  ;;  %v3449_v42 = vpop.permute.xlu0 %934 }
 0x169   :  { %2542 = vset.pattern.permute.xlu1 %v2637_v9  ;;  %v3555_v9 = vld [vmem:[%s4551_s1 + $0x30] sm:$0xff] }
 0x16a   :  { %1438 = vperm.xlu1 %2542, %v2679_v2   ;;  %1470 = vperm.xlu0 %2543, %v2727_v10  }
 0x16b   :  { %v3453_v4 = vpop.permute.xlu1 %922  ;;  %v3455_v6 = vpop.permute.xlu0 %942 }
 0x16e   :  { %1446 = vperm.xlu1 %2542, %v2674_v1   ;;  %1478 = vperm.xlu0 %2543, %v2739_v12  }
 0x16f   :  { %v3459_v27 = vpop.permute.xlu1 %930  ;;  %v3461_v8 = vpop.permute.xlu0 %950 }
 0x172   :  { %1450 = vperm.xlu1 %2542, %v2686_v3   ;;  %1486 = vperm.xlu0 %2543, %v2751_v14  }
 0x173   :  { %v3465_v48 = vpop.permute.xlu1 %938  ;;  %v3467_v2 = vpop.permute.xlu0 %958 }
 0x176   :  { %1458 = vperm.xlu1 %2542, %v2698_v5   ;;  %1494 = vperm.xlu0 %2543, %v2763_v16  }
 0x177   :  { %v3471_v10 = vpop.permute.xlu1 %946  ;;  %v3473_v1 = vpop.permute.xlu0 %966 }
 0x178   :  { %4736 = vst [vmem:[#allocation17_spill] sm:$0xff] %v3471_v10 }
 0x17a   :  { %1466 = vperm.xlu1 %2542, %v4674_v41   ;;  %1502 = vperm.xlu0 %2543, %v2775_v18  }
 0x17b   :  { %v3477_v12 = vpop.permute.xlu1 %954  ;;  %v3479_v3 = vpop.permute.xlu0 %974 }
 0x17c   :  { %4737 = vst [vmem:[#allocation29_spill] sm:$0xff] %v3477_v12  ;;  %v3646_v12 = vld [vmem:[%s4551_s1 + $0x90] sm:$0xff] }
 0x17d   :  { %4758 = vst [vmem:[#allocation54_spill] sm:$0xff] %v3646_v12 }
 0x17e   :  { %1474 = vperm.xlu1 %2542, %v4679_v49   ;;  %1510 = vperm.xlu0 %2543, %v2787_v20  }
 0x17f   :  { %v3483_v14 = vpop.permute.xlu1 %962  ;;  %v3485_v5 = vpop.permute.xlu0 %982 }
 0x180   :  { %4738 = vst [vmem:[#allocation46_spill] sm:$0xff] %v3483_v14  ;;  %4739 = vst [vmem:[#allocation34_spill] sm:$0xff] %v3485_v5 }
 0x182   :  { %1482 = vperm.xlu1 %2542, %v4684_v56   ;;  %1518 = vperm.xlu0 %2543, %v2799_v22  }
 0x183   :  { %v3489_v16 = vpop.permute.xlu1 %970  ;;  %v3491_v41 = vpop.permute.xlu0 %990 }
 0x184   :  { %4740 = vst [vmem:[#allocation13_spill] sm:$0xff] %v3489_v16  ;;  %4741 = vst [vmem:[#allocation31_spill] sm:$0xff] %v3491_v41  ;;  %v3630_v16 = vld [vmem:[%s4551_s1 + $0x80] sm:$0xff]  ;;  %v3640_v41 = vld [vmem:[%s4551_s1 + $0x38] sm:$0xff] }
 0x185   :  { %4757 = vst [vmem:[#allocation41_spill] sm:$0xff] %v3640_v41 }
 0x186   :  { %1490 = vperm.xlu1 %2542, %v4690_v32   ;;  %1526 = vperm.xlu0 %2543, %v4697_v63  }
 0x187   :  { %v3495_v18 = vpop.permute.xlu1 %978  ;;  %v3497_v49 = vpop.permute.xlu0 %998 }
 0x188   :  { %4742 = vst [vmem:[#allocation47_spill] sm:$0xff] %v3495_v18  ;;  %4743 = vst [vmem:[#allocation36_spill] sm:$0xff] %v3497_v49 }
 0x18a   :  { %1498 = vperm.xlu1 %2542, %v4696_v0   ;;  %1534 = vperm.xlu0 %2543, %v2823_v26  }
 0x18b   :  { %v3501_v20 = vpop.permute.xlu1 %986  ;;  %v3503_v56 = vpop.permute.xlu0 %1006 }
 0x18c   :  { %4744 = vst [vmem:[#allocation14_spill] sm:$0xff] %v3501_v20  ;;  %4745 = vst [vmem:[#allocation33_spill] sm:$0xff] %v3503_v56  ;;  %v3614_v20 = vld [vmem:[%s4551_s1 + $0x70] sm:$0xff]  ;;  %v3624_v56 = vld [vmem:[%s4551_s1 + $0x28] sm:$0xff] }
 0x18d   :  { %4754 = vst [vmem:[#allocation20_spill] sm:$0xff] %v3624_v56 }
 0x18e   :  { %1506 = vperm.xlu1 %2542, %v4703_v34   ;;  %1542 = vperm.xlu0 %2543, %v2835_v28  }
 0x18f   :  { %v3507_v22 = vpop.permute.xlu1 %994  ;;  %v3509_v32 = vpop.permute.xlu0 %1014 }
 0x190   :  { %4746 = vst [vmem:[#allocation48_spill] sm:$0xff] %v3507_v22  ;;  %4747 = vst [vmem:[#allocation38_spill] sm:$0xff] %v3509_v32 }
 0x192   :  { %1514 = vperm.xlu1 %2542, %v4709_v35   ;;  %1550 = vperm.xlu0 %2543, %v2847_v30   ;;  %v2638_v30 = vmov 6  }
 0x193   :  { %v3513_v63 = vpop.permute.xlu1 %1002  ;;  %v3515_v0 = vpop.permute.xlu0 %1022 }
 0x194   :  { %4748 = vst [vmem:[#allocation15_spill] sm:$0xff] %v3513_v63  ;;  %4749 = vst [vmem:[#allocation35_spill] sm:$0xff] %v3515_v0  ;;  %v3608_v0 = vld [vmem:[%s4551_s1 + $0x18] sm:$0xff] }
 0x196   :  { %1522 = vperm.xlu1 %2542, %v4715_v59   ;;  %1558 = vperm.xlu0 %2543, %v4723_v13   ;;  %v3535_v13 = vld [vmem:[%s4551_s1 + $0x8] sm:$0xff] }
 0x197   :  { %v3519_v26 = vpop.permute.xlu1 %1010  ;;  %v3521_v34 = vpop.permute.xlu0 %1030 }
 0x198   :  { %4750 = vst [vmem:[#allocation49_spill] sm:$0xff] %v3519_v26  ;;  %4751 = vst [vmem:[#allocation40_spill] sm:$0xff] %v3521_v34  ;;  %v3598_v34 = vld [vmem:[%s4551_s1 + $0x60] sm:$0xff] }
 0x19a   :  { %1530 = vperm.xlu1 %2542, %v4722_v39   ;;  %1566 = vperm.xlu0 %2543, %v4731_v15   ;;  %v3544_v15 = vld [vmem:[%s4551_s1 + $0x20] sm:$0xff] }
 0x19b   :  { %v3525_v28 = vpop.permute.xlu1 %1018 }
 0x19c   :  { %4752 = vst [vmem:[#allocation51_spill] sm:$0xff] %v3525_v28  ;;  %v3527_v35 = vpop.permute.xlu0 %1174 }
 0x19e   :  { %1538 = vperm.xlu1 %2542, %v4730_v44   ;;  %2545 = vset.pattern.permute.xlu0 %v2638_v30 }
 0x19f   :  { %v3530_v40 = vpop.permute.xlu1 %1026  ;;  %1710 = vperm.xlu0 %2545, %v3535_v13  }
 0x1a0   :  { %4753 = vst [vmem:[#allocation16_spill] sm:$0xff] %v3530_v40  ;;  %v3538_v59 = vpop.permute.xlu0 %1186 }
 0x1a2   :  { %1546 = vperm.xlu1 %2542, %v4735_v11  }
 0x1a3   :  { %1722 = vperm.xlu0 %2545, %v3544_v15  }
 0x1a4   :  { %v3547_v39 = vpop.permute.xlu1 %1170  ;;  %v3549_v44 = vpop.permute.xlu0 %1194 }
 0x1a6   :  { %1554 = vperm.xlu1 %2542, %v2842_v29  }
 0x1a7   :  { %1730 = vperm.xlu0 %2545, %v3555_v9  }
 0x1a8   :  { %v3558_v11 = vpop.permute.xlu1 %1178  ;;  %v3560_v40 = vpop.permute.xlu0 %1202 }
 0x1aa   :  { %1562 = vperm.xlu1 %2542, %v2854_v31   ;;  %v3582_v31 = vld [vmem:[%s4551_s1 + $0x50] sm:$0xff] }
 0x1ab   :  { %1738 = vperm.xlu0 %2545, %v3566_v46  }
 0x1ac   :  { %v3569_v29 = vpop.permute.xlu1 %1182  ;;  %v3571_v28 = vpop.permute.xlu0 %1210 }
 0x1ae   :  { %2544 = vset.pattern.permute.xlu1 %v2638_v30  ;;  %v3592_v30 = vld [vmem:[%s4551_s1 + $0x10] sm:$0xff] }
 0x1af   :  { %1706 = vperm.xlu1 %2544, %v3576_v17   ;;  %1746 = vperm.xlu0 %2545, %v3582_v31  }
 0x1b0   :  { %v3585_v26 = vpop.permute.xlu1 %1190  ;;  %v3587_v63 = vpop.permute.xlu0 %1218 }
 0x1b3   :  { %1714 = vperm.xlu1 %2544, %v3592_v30   ;;  %1754 = vperm.xlu0 %2545, %v3598_v34  }
 0x1b4   :  { %v3601_v50 = vpop.permute.xlu1 %1198  ;;  %v3603_v22 = vpop.permute.xlu0 %1226 }
 0x1b7   :  { %1718 = vperm.xlu1 %2544, %v3608_v0   ;;  %1762 = vperm.xlu0 %2545, %v3614_v20  }
 0x1b8   :  { %v3617_v32 = vpop.permute.xlu1 %1206  ;;  %v3619_v18 = vpop.permute.xlu0 %1234 }
 0x1bb   :  { %1726 = vperm.xlu1 %2544, %v3624_v56   ;;  %1770 = vperm.xlu0 %2545, %v3630_v16  }
 0x1bc   :  { %v3633_v49 = vpop.permute.xlu1 %1214  ;;  %v3635_v14 = vpop.permute.xlu0 %1242 }
 0x1bd   :  { %4755 = vst [vmem:[#allocation37_spill] sm:$0xff] %v3633_v49  ;;  %4756 = vst [vmem:[#allocation50_spill] sm:$0xff] %v3635_v14  ;;  %v3656_v49 = vld [vmem:[%s4551_s1 + $0x48] sm:$0xff]  ;;  %v3784_v14 = vld [vmem:[%s4551_s1 + $0xb8] sm:$0xff] }
 0x1be   :  { %4761 = vst [vmem:[#allocation39_spill] sm:$0xff] %v3656_v49 }
 0x1bf   :  { %1734 = vperm.xlu1 %2544, %v3640_v41   ;;  %1778 = vperm.xlu0 %2545, %v3646_v12   ;;  %v3662_v41 = vld [vmem:[%s4551_s1 + $0xa0] sm:$0xff] }
 0x1c0   :  { %v3649_v56 = vpop.permute.xlu1 %1222  ;;  %v3651_v5 = vpop.permute.xlu0 %1250  ;;  %4762 = vst [vmem:[#allocation53_spill] sm:$0xff] %v3662_v41 }
 0x1c1   :  { %4759 = vst [vmem:[#allocation18_spill] sm:$0xff] %v3649_v56  ;;  %4760 = vst [vmem:[#allocation21_spill] sm:$0xff] %v3651_v5  ;;  %v3672_v56 = vld [vmem:[%s4551_s1 + $0x58] sm:$0xff] }
 0x1c2   :  { %4765 = vst [vmem:[#allocation56_spill] sm:$0xff] %v3672_v56 }
 0x1c3   :  { %1742 = vperm.xlu1 %2544, %v3656_v49   ;;  %1786 = vperm.xlu0 %2545, %v3662_v41   ;;  %v3678_v49 = vld [vmem:[%s4551_s1 + $0xb0] sm:$0xff] }
 0x1c4   :  { %v3665_v10 = vpop.permute.xlu1 %1230  ;;  %v3667_v12 = vpop.permute.xlu0 %1258  ;;  %4766 = vst [vmem:[#allocation57_spill] sm:$0xff] %v3678_v49 }
 0x1c5   :  { %4763 = vst [vmem:[#allocation19_spill] sm:$0xff] %v3665_v10  ;;  %4764 = vst [vmem:[#allocation55_spill] sm:$0xff] %v3667_v12  ;;  %v3688_v10 = vld [vmem:[%s4551_s1 + $0x68] sm:$0xff] }
 0x1c6   :  { %4769 = vst [vmem:[#allocation60_spill] sm:$0xff] %v3688_v10 }
 0x1c7   :  { %1750 = vperm.xlu1 %2544, %v3672_v56   ;;  %1794 = vperm.xlu0 %2545, %v3678_v49   ;;  %v3694_v56 = vld [vmem:[%s4551_s1 + $0xc0] sm:$0xff] }
 0x1c8   :  { %v3681_v5 = vpop.permute.xlu1 %1238  ;;  %v3683_v41 = vpop.permute.xlu0 %1266  ;;  %4770 = vst [vmem:[#allocation61_spill] sm:$0xff] %v3694_v56 }
 0x1c9   :  { %4767 = vst [vmem:[#allocation58_spill] sm:$0xff] %v3681_v5  ;;  %4768 = vst [vmem:[#allocation59_spill] sm:$0xff] %v3683_v41  ;;  %v3704_v5 = vld [vmem:[%s4551_s1 + $0x78] sm:$0xff] }
 0x1ca   :  { %4773 = vst [vmem:[#allocation64_spill] sm:$0xff] %v3704_v5 }
 0x1cb   :  { %1758 = vperm.xlu1 %2544, %v3688_v10   ;;  %1802 = vperm.xlu0 %2545, %v3694_v56   ;;  %v3710_v10 = vld [vmem:[%s4551_s1 + $0xd0] sm:$0xff] }
 0x1cc   :  { %v3697_v12 = vpop.permute.xlu1 %1246  ;;  %v3699_v49 = vpop.permute.xlu0 %1274  ;;  %4774 = vst [vmem:[#allocation65_spill] sm:$0xff] %v3710_v10 }
 0x1cd   :  { %4771 = vst [vmem:[#allocation62_spill] sm:$0xff] %v3697_v12  ;;  %4772 = vst [vmem:[#allocation63_spill] sm:$0xff] %v3699_v49  ;;  %v3720_v12 = vld [vmem:[%s4551_s1 + $0x88] sm:$0xff] }
 0x1ce   :  { %4777 = vst [vmem:[#allocation68_spill] sm:$0xff] %v3720_v12 }
 0x1cf   :  { %1766 = vperm.xlu1 %2544, %v3704_v5   ;;  %1810 = vperm.xlu0 %2545, %v3710_v10   ;;  %v3726_v5 = vld [vmem:[%s4551_s1 + $0xe0] sm:$0xff] }
 0x1d0   :  { %v3713_v41 = vpop.permute.xlu1 %1254  ;;  %v3715_v56 = vpop.permute.xlu0 %1282  ;;  %4778 = vst [vmem:[#allocation69_spill] sm:$0xff] %v3726_v5 }
 0x1d1   :  { %4775 = vst [vmem:[#allocation66_spill] sm:$0xff] %v3713_v41  ;;  %4776 = vst [vmem:[#allocation67_spill] sm:$0xff] %v3715_v56  ;;  %v3734_v41 = vadd.s32 128, %v3090_v55  ;;  %v3739_v56 = vld [vmem:[%s4551_s1 + $0x98] sm:$0xff]  ;;  %v3757_v55 = vld [vmem:[%s4551_s1 + $0xa8] sm:$0xff] }
 0x1d2   :  { %4781 = vst [vmem:[#allocation72_spill] sm:$0xff] %v3739_v56  ;;  %4785 = vst [vmem:[#allocation76_spill] sm:$0xff] %v3757_v55 }
 0x1d3   :  { %1774 = vperm.xlu1 %2544, %v3720_v12   ;;  %1818 = vperm.xlu0 %2545, %v3726_v5   ;;  %v3745_v12 = vld [vmem:[%s4551_s1 + $0xf0] sm:$0xff]  ;;  %vm898_vm2 = vcmp.ge.s32.totalorder %v3734_v41, 147  ;;  %vm1166_vm3 = vcmp.ge.s32.totalorder %v3734_v41, 196  ;;  %vm1434_vm4 = vcmp.ge.s32.totalorder %v3734_v41, 245 }
 0x1d4   :  { %v3729_v49 = vpop.permute.xlu1 %1262  ;;  %v3731_v10 = vpop.permute.xlu0 %1290  ;;  %4782 = vst [vmem:[#allocation73_spill] sm:$0xff] %v3745_v12 }
 0x1d5   :  { %4779 = vst [vmem:[#allocation70_spill] sm:$0xff] %v3729_v49  ;;  %4780 = vst [vmem:[#allocation71_spill] sm:$0xff] %v3731_v10 }
 0x1d7   :  { %1782 = vperm.xlu1 %2544, %v3739_v56   ;;  %1826 = vperm.xlu0 %2545, %v3745_v12   ;;  %v3763_v56 = vld [vmem:[%s4551_s1 + $0x100] sm:$0x3]  ;;  %v31_v12 = vld [vmem:[#allocation2 + $0x28] sm:$0xff] }
 0x1d8   :  { %v3748_v49 = vpop.permute.xlu1 %1270  ;;  %v3750_v10 = vpop.permute.xlu0 %1298  ;;  %4786 = vst [vmem:[#allocation77_spill] sm:$0xff] %v3763_v56 }
 0x1d9   :  { %4783 = vst [vmem:[#allocation74_spill] sm:$0xff] %v3748_v49  ;;  %4784 = vst [vmem:[#allocation75_spill] sm:$0xff] %v3750_v10  ;;  %v1038_v49 = vsel %vm898_vm2, %v3431_v47, %v3112_v53  ;;  %v4617_v53 = vmov 7   ;;  %v1050_v47 = vsel %vm898_vm2, %v3437_v54, %v3132_v23  ;;  %v3806_v23 = vld [vmem:[%s4551_s1 + $0xc8] sm:$0xff]  ;;  %v1058_v54 = vsel %vm898_vm2, %v3443_v52, %v3152_v38  ;;  %v3827_v38 = vld [vmem:[%s4551_s1 + $0xd8] sm:$0xff] }
 0x1da   :  { %v1034_v52 = vsel %vm898_vm2, %v3435_v7, %v3110_v25 }
 0x1db   :  { %1790 = vperm.xlu1 %2544, %v3757_v55   ;;  %1834 = vperm.xlu0 %2545, %v3763_v56   ;;  %v1306_v55 = vsel %vm1166_vm3, %v3527_v35, %v1038_v49 }
 0x1dc   :  { %v3771_v10 = vpop.permute.xlu1 %1278 }
 0x1dd   :  { %v3776_v5 = vpop.permute.xlu0 %1442 }
 0x1de   :  { %v1574_v56 = vsel %vm1434_vm4, %v3776_v5, %v1306_v55  ;;  %v43_v55 = vld [vmem:[#allocation2 + $0x88] sm:$0xff] }
 0x1df   :  { %v2242_v62 = vmul.f32 %v1574_v56, %v31_v12  ;;  %1798 = vperm.xlu1 %2544, %v3784_v14   ;;  %2547 = vset.pattern.permute.xlu0 %v4617_v53  ;;  %v1318_v12 = vsel %vm1166_vm3, %v3538_v59, %v1050_v47  ;;  %v1326_v59 = vsel %vm1166_vm3, %v3549_v44, %v1058_v54  ;;  %v27_v44 = vld [vmem:[#allocation2 + $0x8] sm:$0xff] }
 0x1e0   :  { %v3792_v49 = vpop.permute.xlu1 %1286  ;;  %1978 = vperm.xlu0 %2547, %v3535_v13   ;;  %v51_v13 = vld [vmem:[#allocation2 + $0xc8] sm:$0xff] }
 0x1e1   :  { %2375 = vst [vmem:[#allocation5 + $0x28] sm:$0xff] %v2242_v62  ;;  %v3798_v56 = vpop.permute.xlu0 %1454 }
 0x1e2   :  { %v1586_v35 = vsel %vm1434_vm4, %v3798_v56, %v1318_v12 }
 0x1e3   :  { %v2254_v53 = vmul.f32 %v1586_v35, %v43_v55  ;;  %1806 = vperm.xlu1 %2544, %v3806_v23   ;;  %v1302_v35 = vsel %vm1166_vm3, %v3547_v39, %v1034_v52  ;;  %v3858_v39 = vld [vmem:[%s4551_s1 + $0xe8] sm:$0xff] }
 0x1e4   :  { %v3813_v62 = vpop.permute.xlu1 %1294  ;;  %1990 = vperm.xlu0 %2547, %v3544_v15   ;;  %v1066_v15 = vsel %vm898_vm2, %v3449_v42, %v3172_v36 }
 0x1e5   :  { %2387 = vst [vmem:[#allocation5 + $0x88] sm:$0xff] %v2254_v53  ;;  %v3819_v47 = vpop.permute.xlu0 %1462  ;;  %v59_v53 = vld [vmem:[#allocation2 + $0x108] sm:$0xff]  ;;  %v1334_v54 = vsel %vm1166_vm3, %v3560_v40, %v1066_v15  ;;  %v1042_v40 = vsel %vm898_vm2, %v3441_v21, %v3130_v19 }
 0x1e6   :  { %v1594_v55 = vsel %vm1434_vm4, %v3819_v47, %v1326_v59  ;;  %v1074_v59 = vsel %vm898_vm2, %v3455_v6, %v3192_v58  ;;  %v1310_v52 = vsel %vm1166_vm3, %v3558_v11, %v1042_v40  ;;  %v47_v40 = vld [vmem:[#allocation2 + $0xa8] sm:$0xff] }
 0x1e7   :  { %v2262_v12 = vmul.f32 %v1594_v55, %v51_v13  ;;  %1814 = vperm.xlu1 %2544, %v3827_v38   ;;  %v35_v55 = vld [vmem:[#allocation2 + $0x48] sm:$0xff]  ;;  %v1342_v15 = vsel %vm1166_vm3, %v3571_v28, %v1074_v59  ;;  %v3889_v28 = vld [vmem:[%s4551_s1 + $0xf8] sm:$0xff]  ;;  %s2640_s1 = smov [#allocation5]  }
 0x1e8   :  { %1998 = vperm.xlu0 %2547, %v3555_v9   ;;  %v83_v59 = vld [vmem:[#allocation2 + $0x1c8] sm:$0xff]  ;;  %s2508_s18 = sshll.u32 %s2640_s1, 4  ;;  %s2509_s18 = int_to_ptr.vmem [resolvable:$true] %s2508_s18 }
 0x1e9   :  { %2395 = vst [vmem:[#allocation5 + $0xc8] sm:$0xff] %v2262_v12  ;;  %v3845_v13 = vpop.permute.xlu1 %1438  ;;  %v3847_v25 = vpop.permute.xlu0 %1470  ;;  %v67_v12 = vld [vmem:[#allocation2 + $0x148] sm:$0xff]  ;;  %s2603_s21 = scalar_lea.vmem %s2509_s18, 16896  ;;  %p2608_p9 = scmp.lt.s32.totalorder %s2509_s18, %s2509_s18 }
 0x1ea   :  { %v1570_v36 = vsel %vm1434_vm4, %v3845_v13, %v1302_v35  ;;  %v1602_v7 = vsel %vm1434_vm4, %v3847_v25, %v1334_v54  ;;  %v39_v35 = vld [vmem:[#allocation2 + $0x68] sm:$0xff]  ;;  %p2604_p8 = scmp.ne.s32.totalorder %s2509_s18, %s2603_s21  ;;  %p2609_p10 = scmp.lt.s32.totalorder %s2603_s21, %s2603_s21 }
 0x1eb   :  { %v2238_v42 = vmul.f32 %v1570_v36, %v27_v44  ;;  %v2270_v9 = vmul.f32 %v1602_v7, %v59_v53  ;;  %1822 = vperm.xlu1 %2544, %v3858_v39   ;;  %v1046_v44 = vsel %vm898_vm2, %v3447_v37, %v3150_v24  ;;  %v1082_v53 = vsel %vm898_vm2, %v3461_v8, %v3212_v61  ;;  %v75_v54 = vld [vmem:[#allocation2 + $0x188] sm:$0xff] }
 0x1ec   :  { %2006 = vperm.xlu0 %2547, %v3566_v46   ;;  %v1314_v36 = vsel %vm1166_vm3, %v3569_v29, %v1046_v44  ;;  %v1350_v7 = vsel %vm1166_vm3, %v3587_v63, %v1082_v53  ;;  %v1054_v63 = vsel %vm898_vm2, %v3453_v4, %v3170_v33  ;;  %v4788_v53 = vld [vmem:[#allocation50_spill] sm:$0xff]  ;;  %p2610_p11 = por %p2609_p10, %p2608_p9 }
 0x1ed   :  { %2370 = vst [vmem:[#allocation5 + $0x8] sm:$0xff] %v2238_v42  ;;  %2403 = vst [vmem:[#allocation5 + $0x108] sm:$0xff] %v2270_v9  ;;  %v3876_v19 = vpop.permute.xlu1 %1446  ;;  %v3878_v21 = vpop.permute.xlu0 %1478  ;;  %v4787_v42 = vmov 7   ;;  %v1090_v9 = vsel %vm898_vm2, %v3467_v2, %v3232_v45 }
 0x1ee   :  { %v1578_v58 = vsel %vm1434_vm4, %v3876_v19, %v1310_v52  ;;  %v1610_v46 = vsel %vm1434_vm4, %v3878_v21, %v1342_v15  ;;  %v55_v52 = vld [vmem:[#allocation2 + $0xe8] sm:$0xff]  ;;  %p2611_p12 = pnand %p2610_p11, %p2604_p8 }
 0x1ef   :  { %v2246_v6 = vmul.f32 %v1578_v58, %v35_v55  ;;  %v2278_v11 = vmul.f32 %v1610_v46, %v67_v12  ;;  %1830 = vperm.xlu1 %2544, %v3889_v28   ;;  %v1322_v55 = vsel %vm1166_vm3, %v3585_v26, %v1054_v63  ;;  %v1358_v12 = vsel %vm1166_vm3, %v3603_v22, %v1090_v9  ;;  %v91_v15 = vld [vmem:[#allocation2 + $0x208] sm:$0xff] }
 0x1f0   :  { %2014 = vperm.xlu0 %2547, %v3582_v31   ;;  %v1062_v22 = vsel %vm898_vm2, %v3459_v27, %v3190_v51  ;;  %v107_v63 = vld [vmem:[#allocation2 + $0x288] sm:$0xff] }
 0x1f1   :  { %2379 = vst [vmem:[#allocation5 + $0x48] sm:$0xff] %v2246_v6  ;;  %2411 = vst [vmem:[#allocation5 + $0x148] sm:$0xff] %v2278_v11  ;;  %v3907_v24 = vpop.permute.xlu1 %1450  ;;  %v3909_v37 = vpop.permute.xlu0 %1486  ;;  %v1330_v58 = vsel %vm1166_vm3, %v3601_v50, %v1062_v22  ;;  %v63_v6 = vld [vmem:[#allocation2 + $0x128] sm:$0xff] }
 0x1f2   :  { %v1582_v61 = vsel %vm1434_vm4, %v3907_v24, %v1314_v36  ;;  %v1618_v8 = vsel %vm1434_vm4, %v3909_v37, %v1350_v7  ;;  %v99_v11 = vld [vmem:[#allocation2 + $0x248] sm:$0xff]  ;;  %v4791_v7 = vld [vmem:[#allocation26_spill] sm:$0xff] }
 0x1f3   :  { %v2250_v31 = vmul.f32 %v1582_v61, %v39_v35  ;;  %v2286_v29 = vmul.f32 %v1618_v8, %v75_v54  ;;  %2546 = vset.pattern.permute.xlu1 %v4787_v42  ;;  %v4790_v54 = vld [vmem:[#allocation17_spill] sm:$0xff]  ;;  %v4792_v61 = vld [vmem:[#allocation34_spill] sm:$0xff] }
 0x1f4   :  { %1974 = vperm.xlu1 %2546, %v3576_v17   ;;  %2022 = vperm.xlu0 %2547, %v3598_v34   ;;  %v1098_v34 = vsel %vm898_vm2, %v3473_v1, %v3252_v60  ;;  %v1114_v8 = vsel %vm898_vm2, %v4792_v61, %v4791_v7  ;;  %v71_v42 = vld [vmem:[#allocation2 + $0x168] sm:$0xff]  ;;  %v4807_v7 = vld [vmem:[#allocation28_spill] sm:$0xff] }
 0x1f5   :  { %2383 = vst [vmem:[#allocation5 + $0x68] sm:$0xff] %v2250_v31  ;;  %2419 = vst [vmem:[#allocation5 + $0x188] sm:$0xff] %v2286_v29  ;;  %v3934_v33 = vpop.permute.xlu1 %1458  ;;  %v3936_v4 = vpop.permute.xlu0 %1494  ;;  %v1366_v46 = vsel %vm1166_vm3, %v3619_v18, %v1098_v34  ;;  %v1070_v18 = vsel %vm898_vm2, %v3465_v48, %v3210_v43  ;;  %v4793_v31 = vld [vmem:[#allocation20_spill] sm:$0xff]  ;;  %v4794_v29 = vld [vmem:[#allocation54_spill] sm:$0xff] }
 0x1f6   :  { %v1590_v45 = vsel %vm1434_vm4, %v3934_v33, %v1322_v55  ;;  %v1626_v17 = vsel %vm1434_vm4, %v3936_v4, %v1358_v12  ;;  %v1338_v44 = vsel %vm1166_vm3, %v3617_v32, %v1070_v18  ;;  %v4795_v9 = vld [vmem:[#allocation37_spill] sm:$0xff]  ;;  %v4797_v34 = vld [vmem:[#allocation8_spill] sm:$0xff] }
 0x1f7   :  { %v2258_v2 = vmul.f32 %v1590_v45, %v47_v40  ;;  %v2294_v26 = vmul.f32 %v1626_v17, %v83_v59  ;;  %v4796_v59 = vld [vmem:[#allocation21_spill] sm:$0xff]  ;;  %v4808_v61 = vld [vmem:[#allocation36_spill] sm:$0xff] }
 0x1f8   :  { %1982 = vperm.xlu1 %2546, %v3592_v30   ;;  %2030 = vperm.xlu0 %2547, %v3614_v20   ;;  %v1106_v30 = vsel %vm898_vm2, %v3479_v3, %v3272_v57  ;;  %v1382_v55 = vsel %vm1166_vm3, %v4796_v59, %v1114_v8  ;;  %v115_v18 = vld [vmem:[#allocation2 + $0x2c8] sm:$0xff]  ;;  %v1130_v8 = vsel %vm898_vm2, %v4808_v61, %v4807_v7  ;;  %v4812_v59 = vld [vmem:[#allocation59_spill] sm:$0xff] }
 0x1f9   :  { %2391 = vst [vmem:[#allocation5 + $0xa8] sm:$0xff] %v2258_v2  ;;  %2427 = vst [vmem:[#allocation5 + $0x1c8] sm:$0xff] %v2294_v26  ;;  %v3960_v51 = vpop.permute.xlu1 %1466  ;;  %v3962_v27 = vpop.permute.xlu0 %1502  ;;  %v1374_v35 = vsel %vm1166_vm3, %v4788_v53, %v1106_v30  ;;  %v4803_v30 = vld [vmem:[#allocation18_spill] sm:$0xff]  ;;  %v4821_v61 = vld [vmem:[#allocation9_spill] sm:$0xff] }
 0x1fa   :  { %v1598_v60 = vsel %vm1434_vm4, %v3960_v51, %v1330_v58  ;;  %v1634_v1 = vsel %vm1434_vm4, %v3962_v27, %v1366_v46  ;;  %v4799_v58 = vld [vmem:[#allocation23_spill] sm:$0xff] }
 0x1fb   :  { %v2266_v20 = vmul.f32 %v1598_v60, %v55_v52  ;;  %v2302_v50 = vmul.f32 %v1634_v1, %v91_v15  ;;  %v4798_v52 = vld [vmem:[#allocation29_spill] sm:$0xff]  ;;  %v4800_v46 = vld [vmem:[#allocation31_spill] sm:$0xff] }
 0x1fc   :  { %1986 = vperm.xlu1 %2546, %v3608_v0   ;;  %2038 = vperm.xlu0 %2547, %v3630_v16   ;;  %v4789_v0 = vld [vmem:[#allocation24_spill] sm:$0xff]  ;;  %v1086_v15 = vsel %vm898_vm2, %v4798_v52, %v4797_v34  ;;  %v1122_v60 = vsel %vm898_vm2, %v4800_v46, %v4799_v58  ;;  %v4801_v1 = vld [vmem:[#allocation41_spill] sm:$0xff] }
 0x1fd   :  { %2399 = vst [vmem:[#allocation5 + $0xe8] sm:$0xff] %v2266_v20  ;;  %2435 = vst [vmem:[#allocation5 + $0x208] sm:$0xff] %v2302_v50  ;;  %v3986_v43 = vpop.permute.xlu1 %1474  ;;  %v3988_v48 = vpop.permute.xlu0 %1510  ;;  %v1078_v36 = vsel %vm898_vm2, %v4790_v54, %v4789_v0  ;;  %v4802_v20 = vld [vmem:[#allocation53_spill] sm:$0xff]  ;;  %v4805_v0 = vld [vmem:[#allocation22_spill] sm:$0xff] }
 0x1fe   :  { %v1606_v57 = vsel %vm1434_vm4, %v3986_v43, %v1338_v44  ;;  %v1642_v3 = vsel %vm1434_vm4, %v3988_v48, %v1374_v35  ;;  %v1346_v40 = vsel %vm1166_vm3, %v4795_v9, %v1078_v36  ;;  %v79_v50 = vld [vmem:[#allocation2 + $0x1a8] sm:$0xff]  ;;  %v4806_v54 = vld [vmem:[#allocation46_spill] sm:$0xff]  ;;  %v4811_v9 = vld [vmem:[#allocation19_spill] sm:$0xff] }
 0x1ff   :  { %v2274_v16 = vmul.f32 %v1606_v57, %v63_v6  ;;  %v2310_v32 = vmul.f32 %v1642_v3, %v99_v11  ;;  %v1354_v6 = vsel %vm1166_vm3, %v4803_v30, %v1086_v15  ;;  %v4804_v11 = vld [vmem:[#allocation55_spill] sm:$0xff]  ;;  %v1094_v36 = vsel %vm898_vm2, %v4806_v54, %v4805_v0  ;;  %v4813_v15 = vld [vmem:[#allocation42_spill] sm:$0xff]  ;;  %v4814_v58 = vld [vmem:[#allocation13_spill] sm:$0xff] }
 0x200   :  { %1994 = vperm.xlu1 %2546, %v4793_v31   ;;  %2046 = vperm.xlu0 %2547, %v4794_v29   ;;  %v1390_v44 = vsel %vm1166_vm3, %v4804_v11, %v1122_v60  ;;  %v4809_v31 = vld [vmem:[#allocation39_spill] sm:$0xff]  ;;  %v4810_v29 = vld [vmem:[#allocation57_spill] sm:$0xff]  ;;  %v1102_v46 = vsel %vm898_vm2, %v4814_v58, %v4813_v15  ;;  %v4819_v11 = vld [vmem:[#allocation58_spill] sm:$0xff] }
 0x201   :  { %2407 = vst [vmem:[#allocation5 + $0x128] sm:$0xff] %v2274_v16  ;;  %2443 = vst [vmem:[#allocation5 + $0x248] sm:$0xff] %v2310_v32  ;;  %v4012_v12 = vpop.permute.xlu1 %1482  ;;  %v4014_v45 = vpop.permute.xlu0 %1518  ;;  %v4815_v60 = vld [vmem:[#allocation25_spill] sm:$0xff] }
 0x202   :  { %v1614_v17 = vsel %vm1434_vm4, %v4012_v12, %v1346_v40  ;;  %v1650_v2 = vsel %vm1434_vm4, %v4014_v45, %v1382_v55  ;;  %v1362_v40 = vsel %vm1166_vm3, %v4811_v9, %v1094_v36  ;;  %v1398_v55 = vsel %vm1166_vm3, %v4812_v59, %v1130_v8  ;;  %v95_v30 = vld [vmem:[#allocation2 + $0x228] sm:$0xff]  ;;  %v4822_v8 = vld [vmem:[#allocation47_spill] sm:$0xff]  ;;  %v4825_v9 = vld [vmem:[#allocation60_spill] sm:$0xff] }
 0x203   :  { %v2282_v26 = vmul.f32 %v1614_v17, %v71_v42  ;;  %v2318_v22 = vmul.f32 %v1650_v2, %v107_v63  ;;  %v87_v42 = vld [vmem:[#allocation2 + $0x1e8] sm:$0xff] }
 0x204   :  { %2002 = vperm.xlu1 %2546, %v4801_v1   ;;  %2054 = vperm.xlu0 %2547, %v4802_v20   ;;  %v123_v63 = vld [vmem:[#allocation2 + $0x308] sm:$0xff] }
 0x205   :  { %2415 = vst [vmem:[#allocation5 + $0x168] sm:$0xff] %v2282_v26  ;;  %2451 = vst [vmem:[#allocation5 + $0x288] sm:$0xff] %v2318_v22  ;;  %v4038_v53 = vpop.permute.xlu1 %1490  ;;  %v4040_v35 = vpop.permute.xlu0 %1526  ;;  %v4816_v1 = vld [vmem:[#allocation33_spill] sm:$0xff] }
 0x206   :  { %v1622_v57 = vsel %vm1434_vm4, %v4038_v53, %v1354_v6  ;;  %v1658_v3 = vsel %vm1434_vm4, %v4040_v35, %v1390_v44  ;;  %v1138_v20 = vsel %vm898_vm2, %v4816_v1, %v4815_v60  ;;  %v131_v6 = vld [vmem:[#allocation2 + $0x348] sm:$0xff]  ;;  %v1370_v44 = vsel %vm1166_vm3, %v4819_v11, %v1102_v46  ;;  %v4832_v11 = vld [vmem:[#allocation35_spill] sm:$0xff] }
 0x207   :  { %v2290_v16 = vmul.f32 %v1622_v57, %v79_v50  ;;  %v2326_v32 = vmul.f32 %v1658_v3, %v115_v18  ;;  %v4817_v50 = vld [vmem:[#allocation56_spill] sm:$0xff]  ;;  %v4818_v18 = vld [vmem:[#allocation61_spill] sm:$0xff]  ;;  %v4820_v57 = vld [vmem:[#allocation63_spill] sm:$0xff] }
 0x208   :  { %2010 = vperm.xlu1 %2546, %v4809_v31   ;;  %2062 = vperm.xlu0 %2547, %v4810_v29   ;;  %v1406_v3 = vsel %vm1166_vm3, %v4820_v57, %v1138_v20  ;;  %v1110_v31 = vsel %vm898_vm2, %v4822_v8, %v4821_v61  ;;  %v4823_v29 = vld [vmem:[#allocation30_spill] sm:$0xff]  ;;  %v103_v59 = vld [vmem:[#allocation2 + $0x268] sm:$0xff]  ;;  %v4833_v57 = vld [vmem:[#allocation64_spill] sm:$0xff] }
 0x209   :  { %2423 = vst [vmem:[#allocation5 + $0x1a8] sm:$0xff] %v2290_v16  ;;  %2459 = vst [vmem:[#allocation5 + $0x2c8] sm:$0xff] %v2326_v32  ;;  %v4064_v17 = vpop.permute.xlu1 %1498  ;;  %v4066_v2 = vpop.permute.xlu0 %1534  ;;  %v4836_v61 = vld [vmem:[#allocation71_spill] sm:$0xff] }
 0x20a   :  { %v1630_v26 = vsel %vm1434_vm4, %v4064_v17, %v1362_v40  ;;  %v1666_v22 = vsel %vm1434_vm4, %v4066_v2, %v1398_v55  ;;  %v4826_v40 = vld [vmem:[#allocation65_spill] sm:$0xff] }
 0x20b   :  { %v2298_v34 = vmul.f32 %v1630_v26, %v87_v42  ;;  %v2334_v52 = vmul.f32 %v1666_v22, %v123_v63  ;;  %v4824_v42 = vld [vmem:[#allocation38_spill] sm:$0xff]  ;;  %v139_v55 = vld [vmem:[#allocation2 + $0x388] sm:$0xff] }
 0x20c   :  { %2018 = vperm.xlu1 %2546, %v4817_v50   ;;  %2070 = vperm.xlu0 %2547, %v4818_v18   ;;  %v1146_v63 = vsel %vm898_vm2, %v4824_v42, %v4823_v29  ;;  %v4827_v26 = vld [vmem:[#allocation62_spill] sm:$0xff]  ;;  %v4829_v50 = vld [vmem:[#allocation43_spill] sm:$0xff] }
 0x20d   :  { %2431 = vst [vmem:[#allocation5 + $0x1e8] sm:$0xff] %v2298_v34  ;;  %2467 = vst [vmem:[#allocation5 + $0x308] sm:$0xff] %v2334_v52  ;;  %v4090_v16 = vpop.permute.xlu1 %1506  ;;  %v4092_v32 = vpop.permute.xlu0 %1542  ;;  %v1378_v22 = vsel %vm1166_vm3, %v4827_v26, %v1110_v31  ;;  %v4828_v34 = vld [vmem:[#allocation67_spill] sm:$0xff]  ;;  %v4830_v18 = vld [vmem:[#allocation14_spill] sm:$0xff] }
 0x20e   :  { %v1638_v0 = vsel %vm1434_vm4, %v4090_v16, %v1370_v44  ;;  %v1674_v54 = vsel %vm1434_vm4, %v4092_v32, %v1406_v3  ;;  %v1414_v52 = vsel %vm1166_vm3, %v4828_v34, %v1146_v63  ;;  %v4834_v3 = vld [vmem:[#allocation69_spill] sm:$0xff]  ;;  %v4841_v34 = vld [vmem:[#allocation40_spill] sm:$0xff] }
 0x20f   :  { %v2306_v36 = vmul.f32 %v1638_v0, %v95_v30  ;;  %v2342_v7 = vmul.f32 %v1674_v54, %v131_v6  ;;  %v1118_v30 = vsel %vm898_vm2, %v4830_v18, %v4829_v50  ;;  %v4831_v6 = vld [vmem:[#allocation27_spill] sm:$0xff]  ;;  %v111_v0 = vld [vmem:[#allocation2 + $0x2a8] sm:$0xff]  ;;  %v4844_v50 = vld [vmem:[#allocation70_spill] sm:$0xff] }
 0x210   :  { %2026 = vperm.xlu1 %2546, %v4825_v9   ;;  %2078 = vperm.xlu0 %2547, %v4826_v40   ;;  %v1154_v44 = vsel %vm898_vm2, %v4832_v11, %v4831_v6  ;;  %v147_v54 = vld [vmem:[#allocation2 + $0x3c8] sm:$0xff] }
 0x211   :  { %2439 = vst [vmem:[#allocation5 + $0x228] sm:$0xff] %v2306_v36  ;;  %2475 = vst [vmem:[#allocation5 + $0x348] sm:$0xff] %v2342_v7  ;;  %v4116_v15 = vpop.permute.xlu1 %1514  ;;  %v4118_v58 = vpop.permute.xlu0 %1550  ;;  %v4835_v36 = vld [vmem:[#allocation66_spill] sm:$0xff]  ;;  %v1422_v8 = vsel %vm1166_vm3, %v4836_v61, %v1154_v44 }
 0x212   :  { %v1646_v46 = vsel %vm1434_vm4, %v4116_v15, %v1378_v22  ;;  %v1682_v60 = vsel %vm1434_vm4, %v4118_v58, %v1414_v52  ;;  %v1386_v7 = vsel %vm1166_vm3, %v4835_v36, %v1118_v30  ;;  %v4840_v22 = vld [vmem:[#allocation32_spill] sm:$0xff]  ;;  %v4845_v30 = vld [vmem:[#allocation75_spill] sm:$0xff] }
 0x213   :  { %v2314_v1 = vmul.f32 %v1646_v46, %v103_v59  ;;  %v2350_v20 = vmul.f32 %v1682_v60, %v139_v55  ;;  %v4838_v59 = vld [vmem:[#allocation10_spill] sm:$0xff]  ;;  %v4839_v55 = vld [vmem:[#allocation48_spill] sm:$0xff]  ;;  %v1162_v52 = vsel %vm898_vm2, %v4841_v34, %v4840_v22  ;;  %v4843_v60 = vld [vmem:[#allocation73_spill] sm:$0xff] }
 0x214   :  { %2034 = vperm.xlu1 %2546, %v4833_v57   ;;  %2086 = vperm.xlu0 %2547, %v4834_v3   ;;  %v1126_v26 = vsel %vm898_vm2, %v4839_v55, %v4838_v59  ;;  %v4842_v46 = vld [vmem:[#allocation68_spill] sm:$0xff]  ;;  %v1430_v6 = vsel %vm1166_vm3, %v4845_v30, %v1162_v52  ;;  %v4854_v34 = vld [vmem:[#allocation11_spill] sm:$0xff]  ;;  %v4855_v52 = vld [vmem:[#allocation49_spill] sm:$0xff] }
 0x215   :  { %2447 = vst [vmem:[#allocation5 + $0x268] sm:$0xff] %v2314_v1  ;;  %2483 = vst [vmem:[#allocation5 + $0x388] sm:$0xff] %v2350_v20  ;;  %v4142_v31 = vpop.permute.xlu1 %1522  ;;  %v4144_v29 = vpop.permute.xlu0 %1558  ;;  %v119_v1 = vld [vmem:[#allocation2 + $0x2e8] sm:$0xff]  ;;  %v1394_v18 = vsel %vm1166_vm3, %v4844_v50, %v1126_v26  ;;  %v4848_v36 = vld [vmem:[#allocation44_spill] sm:$0xff] }
 0x216   :  { %4837 = vst [vmem:[#allocation50_spill] sm:$0xff] %v4142_v31  ;;  %v1654_v42 = vsel %vm1434_vm4, %v4142_v31, %v1386_v7  ;;  %v1690_v63 = vsel %vm1434_vm4, %v4144_v29, %v1422_v8  ;;  %v155_v20 = vld [vmem:[#allocation2 + $0x408] sm:$0x3]  ;;  %v4849_v7 = vld [vmem:[#allocation15_spill] sm:$0xff]  ;;  %v4850_v8 = vld [vmem:[#allocation72_spill] sm:$0xff] }
 0x217   :  { %v2322_v9 = vmul.f32 %v1654_v42, %v111_v0  ;;  %v2358_v40 = vmul.f32 %v1690_v63, %v147_v54  ;;  %v1134_v61 = vsel %vm898_vm2, %v4849_v7, %v4848_v36  ;;  %v4851_v42 = vld [vmem:[#allocation77_spill] sm:$0xff]  ;;  %v45_v31 = vld [vmem:[#allocation2 + $0x98] sm:$0xff] }
 0x218   :  { %2042 = vperm.xlu1 %2546, %v4842_v46   ;;  %2094 = vperm.xlu0 %2547, %v4843_v60   ;;  %v127_v63 = vld [vmem:[#allocation2 + $0x328] sm:$0xff]  ;;  %v1142_v46 = vsel %vm898_vm2, %v4855_v52, %v4854_v34  ;;  %v4856_v60 = vld [vmem:[#allocation76_spill] sm:$0xff] }
 0x219   :  { %2455 = vst [vmem:[#allocation5 + $0x2a8] sm:$0xff] %v2322_v9  ;;  %2491 = vst [vmem:[#allocation5 + $0x3c8] sm:$0xff] %v2358_v40  ;;  %v4168_v11 = vpop.permute.xlu1 %1530  ;;  %v4170_v44 = vpop.permute.xlu0 %1566  ;;  %v4852_v9 = vld [vmem:[#allocation74_spill] sm:$0xff] }
 0x21a   :  { %4846 = vst [vmem:[#allocation24_spill] sm:$0xff] %v4168_v11  ;;  %4847 = vst [vmem:[#allocation17_spill] sm:$0xff] %v4170_v44  ;;  %v1662_v57 = vsel %vm1434_vm4, %v4168_v11, %v1394_v18  ;;  %v1698_v3 = vsel %vm1434_vm4, %v4170_v44, %v1430_v6  ;;  %v1402_v40 = vsel %vm1166_vm3, %v4852_v9, %v1134_v61  ;;  %v151_v9 = vld [vmem:[#allocation2 + $0x3e8] sm:$0xff]  ;;  %v44_v44 = vld [vmem:[#allocation2 + $0x90] sm:$0xff] }
 0x21b   :  { %v2330_v0 = vmul.f32 %v1662_v57, %v119_v1  ;;  %v2366_v54 = vmul.f32 %v1698_v3, %v155_v20  ;;  %v135_v1 = vld [vmem:[#allocation2 + $0x368] sm:$0xff]  ;;  %v1410_v20 = vsel %vm1166_vm3, %v3771_v10, %v1142_v46  ;;  %v4859_v3 = vld [vmem:[#allocation51_spill] sm:$0xff] }
 0x21c   :  { %2050 = vperm.xlu1 %2546, %v4850_v8   ;;  %2102 = vperm.xlu0 %2547, %v4851_v42   ;;  %v4858_v57 = vld [vmem:[#allocation45_spill] sm:$0xff]  ;;  %v4861_v42 = vld [vmem:[#allocation12_spill] sm:$0xff] }
 0x21d   :  { %2463 = vst [vmem:[#allocation5 + $0x2e8] sm:$0xff] %v2330_v0  ;;  %2499 = vst [vmem:[#allocation5 + $0x408] sm:$0x3] %v2366_v54  ;;  %v4187_v59 = vpop.permute.xlu1 %1538  ;;  %v1150_v0 = vsel %vm898_vm2, %v4859_v3, %v4858_v57  ;;  %v143_v54 = vld [vmem:[#allocation2 + $0x3a8] sm:$0xff] }
 0x21e   :  { %4853 = vst [vmem:[#allocation26_spill] sm:$0xff] %v4187_v59  ;;  %v1670_v55 = vsel %vm1434_vm4, %v4187_v59, %v1402_v40  ;;  %v4192_v26 = vpop.permute.xlu0 %1710  ;;  %v1418_v10 = vsel %vm1166_vm3, %v3792_v49, %v1150_v0 }
 0x21f   :  { %v2338_v22 = vmul.f32 %v1670_v55, %v127_v63  ;;  %v4862_v63 = vld [vmem:[#allocation16_spill] sm:$0xff] }
 0x220   :  { %2058 = vperm.xlu1 %2546, %v4856_v60  }
 0x221   :  { %2471 = vst [vmem:[#allocation5 + $0x328] sm:$0xff] %v2338_v22  ;;  %v4202_v50 = vpop.permute.xlu1 %1546 }
 0x222   :  { %4857 = vst [vmem:[#allocation34_spill] sm:$0xff] %v4202_v50  ;;  %v1678_v18 = vsel %vm1434_vm4, %v4202_v50, %v1410_v20  ;;  %v4207_v30 = vpop.permute.xlu0 %1722 }
 0x223   :  { %v2346_v6 = vmul.f32 %v1678_v18, %v135_v1 }
 0x224   :  { %2066 = vperm.xlu1 %2546, %v3784_v14   ;;  %v1158_v14 = vsel %vm898_vm2, %v4862_v63, %v4861_v42 }
 0x225   :  { %2479 = vst [vmem:[#allocation5 + $0x368] sm:$0xff] %v2346_v6  ;;  %v4217_v36 = vpop.permute.xlu1 %1554  ;;  %v1426_v49 = vsel %vm1166_vm3, %v3813_v62, %v1158_v14  ;;  %v4864_v14 = vld [vmem:[#allocation52_spill] sm:$0xff] }
 0x226   :  { %4860 = vst [vmem:[#allocation20_spill] sm:$0xff] %v4217_v36  ;;  %v1686_v7 = vsel %vm1434_vm4, %v4217_v36, %v1418_v10  ;;  %v4222_v61 = vpop.permute.xlu0 %1730  ;;  %v32_v36 = vld [vmem:[#allocation2 + $0x30] sm:$0xff] }
 0x227   :  { %v2354_v8 = vmul.f32 %v1686_v7, %v143_v54 }
 0x228   :  { %2074 = vperm.xlu1 %2546, %v3806_v23  }
 0x229   :  { %2487 = vst [vmem:[#allocation5 + $0x3a8] sm:$0xff] %v2354_v8  ;;  %v4232_v40 = vpop.permute.xlu1 %1562 }
 0x22a   :  { %4863 = vst [vmem:[#allocation54_spill] sm:$0xff] %v4232_v40  ;;  %v1694_v55 = vsel %vm1434_vm4, %v4232_v40, %v1426_v49  ;;  %v4237_v22 = vpop.permute.xlu0 %1738 }
 0x22b   :  { %v2362_v34 = vmul.f32 %v1694_v55, %v151_v9  ;;  %v4287_v9 = vadd.s32 256, %v4864_v14 }
 0x22c   :  { %2082 = vperm.xlu1 %2546, %v3827_v38  }
 0x22d   :  { %2495 = vst [vmem:[#allocation5 + $0x3e8] sm:$0xff] %v2362_v34  ;;  %vm1703_vm5 = vcmp.ge.s32.totalorder %v4287_v9, 294  ;;  %vm1971_vm6 = vcmp.ge.s32.totalorder %v4287_v9, 343  ;;  %v33_v34 = vld [vmem:[#allocation2 + $0x38] sm:$0xff] }
 0x22e   :  { %v4240_v52 = vpop.permute.xlu1 %1706  ;;  %v4242_v23 = vpop.permute.xlu0 %1746  ;;  %v1843_v50 = vsel %vm1703_vm5, %v4192_v26, %v3776_v5 }
 0x230   :  { %2090 = vperm.xlu1 %2546, %v3858_v39  }
 0x232   :  { %v4245_v62 = vpop.permute.xlu1 %1714  ;;  %v4247_v46 = vpop.permute.xlu0 %1754 }
 0x234   :  { %2098 = vperm.xlu1 %2546, %v3889_v28  }
 0x236   :  { %v4250_v41 = vpop.permute.xlu1 %1718  ;;  %v4252_v60 = vpop.permute.xlu0 %1762 }
 0x23a   :  { %v4254_v1 = vpop.permute.xlu1 %1726  ;;  %v4256_v38 = vpop.permute.xlu0 %1770 }
 0x23e   :  { %v4258_v20 = vpop.permute.xlu1 %1734  ;;  %v4260_v18 = vpop.permute.xlu0 %1778 }
 0x242   :  { %v4262_v6 = vpop.permute.xlu1 %1742  ;;  %v4264_v39 = vpop.permute.xlu0 %1786 }
 0x246   :  { %v4266_v57 = vpop.permute.xlu1 %1750  ;;  %v4268_v3 = vpop.permute.xlu0 %1794 }
 0x24a   :  { %v4270_v28 = vpop.permute.xlu1 %1758  ;;  %v4272_v0 = vpop.permute.xlu0 %1802 }
 0x24e   :  { %v4274_v54 = vpop.permute.xlu1 %1766  ;;  %v4276_v10 = vpop.permute.xlu0 %1810 }
 0x252   :  { %v4278_v7 = vpop.permute.xlu1 %1774  ;;  %v4280_v8 = vpop.permute.xlu0 %1818 }
 0x256   :  { %v4282_v42 = vpop.permute.xlu1 %1782  ;;  %v4284_v63 = vpop.permute.xlu0 %1826 }
 0x25a   :  { %v4289_v49 = vpop.permute.xlu1 %1790  ;;  %v4291_v55 = vpop.permute.xlu0 %1834 }
 0x25b   :  { %4865 = vst [vmem:[#allocation37_spill] sm:$0xff] %v4289_v49  ;;  %4866 = vst [vmem:[#allocation21_spill] sm:$0xff] %v4291_v55 }
 0x25e   :  { %v4295_v40 = vpop.permute.xlu1 %1798 }
 0x25f   :  { %4867 = vst [vmem:[#allocation8_spill] sm:$0xff] %v4295_v40  ;;  %v1979_v59 = vpop.permute.xlu0 %1978  ;;  %v1855_v40 = vsel %vm1703_vm5, %v4207_v30, %v3798_v56 }
 0x260   :  { %v2111_v14 = vsel %vm1971_vm6, %v1979_v59, %v1843_v50  ;;  %v2244_v11 = vmul.f32 %v1979_v59, %v33_v34  ;;  %v53_v34 = vld [vmem:[#allocation2 + $0xd8] sm:$0xff] }
 0x261   :  { %v2243_v49 = vmul.f32 %v2111_v14, %v32_v36  ;;  %v1863_v14 = vsel %vm1703_vm5, %v4222_v61, %v3819_v47 }
 0x262   :  { %2377 = vst.msk [vmem:[#allocation5 + $0x38] sm:$0xff] %vm2372_vm7, %v2244_v11  ;;  %v4304_v55 = vpop.permute.xlu1 %1806  ;;  %v52_v11 = vld [vmem:[#allocation2 + $0xd0] sm:$0xff] }
 0x263   :  { %2376 = vst [vmem:[#allocation5 + $0x30] sm:$0xff] %v2243_v49  ;;  %v1991_v5 = vpop.permute.xlu0 %1990 }
 0x264   :  { %v2123_v26 = vsel %vm1971_vm6, %v1991_v5, %v1855_v40  ;;  %v2256_v50 = vmul.f32 %v1991_v5, %v45_v31  ;;  %v61_v31 = vld [vmem:[#allocation2 + $0x118] sm:$0xff]  ;;  %v60_v5 = vld [vmem:[#allocation2 + $0x110] sm:$0xff] }
 0x265   :  { %v2255_v59 = vmul.f32 %v2123_v26, %v44_v44  ;;  %v1871_v26 = vsel %vm1703_vm5, %v4237_v22, %v3847_v25 }
 0x266   :  { %2389 = vst.msk [vmem:[#allocation5 + $0x98] sm:$0xff] %vm2372_vm7, %v2256_v50  ;;  %v4313_v36 = vpop.permute.xlu1 %1814 }
 0x267   :  { %2388 = vst [vmem:[#allocation5 + $0x90] sm:$0xff] %v2255_v59  ;;  %v1999_v56 = vpop.permute.xlu0 %1998 }
 0x268   :  { %v2131_v30 = vsel %vm1971_vm6, %v1999_v56, %v1863_v14  ;;  %v2264_v49 = vmul.f32 %v1999_v56, %v53_v34  ;;  %v69_v34 = vld [vmem:[#allocation2 + $0x158] sm:$0xff]  ;;  %v68_v14 = vld [vmem:[#allocation2 + $0x150] sm:$0xff]  ;;  %v1879_v56 = vsel %vm1703_vm5, %v4242_v23, %v3878_v21  ;;  %v1887_v21 = vsel %vm1703_vm5, %v4247_v46, %v3909_v37 }
 0x269   :  { %v2263_v40 = vmul.f32 %v2131_v30, %v52_v11  ;;  %v36_v37 = vld [vmem:[#allocation2 + $0x50] sm:$0xff]  ;;  %v1847_v46 = vsel %vm1703_vm5, %v4245_v62, %v3876_v19  ;;  %v41_v19 = vld [vmem:[#allocation2 + $0x78] sm:$0xff] }
 0x26a   :  { %2397 = vst.msk [vmem:[#allocation5 + $0xd8] sm:$0xff] %vm2372_vm7, %v2264_v49  ;;  %v4322_v44 = vpop.permute.xlu1 %1822  ;;  %v93_v62 = vld [vmem:[#allocation2 + $0x218] sm:$0xff] }
 0x26b   :  { %2396 = vst [vmem:[#allocation5 + $0xd0] sm:$0xff] %v2263_v40  ;;  %v2007_v47 = vpop.permute.xlu0 %2006  ;;  %v29_v40 = vld [vmem:[#allocation2 + $0x18] sm:$0xff] }
 0x26c   :  { %v2139_v61 = vsel %vm1971_vm6, %v2007_v47, %v1871_v26  ;;  %v2272_v50 = vmul.f32 %v2007_v47, %v61_v31  ;;  %v77_v31 = vld [vmem:[#allocation2 + $0x198] sm:$0xff]  ;;  %v76_v26 = vld [vmem:[#allocation2 + $0x190] sm:$0xff]  ;;  %v1839_v47 = vsel %vm1703_vm5, %v4240_v52, %v3845_v13 }
 0x26d   :  { %v2271_v59 = vmul.f32 %v2139_v61, %v60_v5  ;;  %v28_v5 = vld [vmem:[#allocation2 + $0x10] sm:$0xff]  ;;  %v85_v13 = vld [vmem:[#allocation2 + $0x1d8] sm:$0xff] }
 0x26e   :  { %2405 = vst.msk [vmem:[#allocation5 + $0x118] sm:$0xff] %vm2372_vm7, %v2272_v50  ;;  %v4331_v11 = vpop.permute.xlu1 %1830  ;;  %v84_v52 = vld [vmem:[#allocation2 + $0x1d0] sm:$0xff] }
 0x26f   :  { %2404 = vst [vmem:[#allocation5 + $0x110] sm:$0xff] %v2271_v59  ;;  %v2015_v25 = vpop.permute.xlu0 %2014 }
 0x270   :  { %v2147_v22 = vsel %vm1971_vm6, %v2015_v25, %v1879_v56  ;;  %v2280_v30 = vmul.f32 %v2015_v25, %v69_v34 }
 0x271   :  { %v2279_v49 = vmul.f32 %v2147_v22, %v68_v14  ;;  %v37_v22 = vld [vmem:[#allocation2 + $0x58] sm:$0xff] }
 0x272   :  { %2413 = vst.msk [vmem:[#allocation5 + $0x158] sm:$0xff] %vm2372_vm7, %v2280_v30  ;;  %v1895_v30 = vsel %vm1703_vm5, %v4252_v60, %v3936_v4  ;;  %v40_v4 = vld [vmem:[#allocation2 + $0x70] sm:$0xff] }
 0x273   :  { %2412 = vst [vmem:[#allocation5 + $0x150] sm:$0xff] %v2279_v49  ;;  %v1975_v23 = vpop.permute.xlu1 %1974  ;;  %v2023_v61 = vpop.permute.xlu0 %2022  ;;  %v92_v60 = vld [vmem:[#allocation2 + $0x210] sm:$0xff] }
 0x274   :  { %v2107_v50 = vsel %vm1971_vm6, %v1975_v23, %v1839_v47  ;;  %v2240_v59 = vmul.f32 %v1975_v23, %v29_v40  ;;  %v2155_v34 = vsel %vm1971_vm6, %v2023_v61, %v1887_v21  ;;  %v2288_v14 = vmul.f32 %v2023_v61, %v77_v31 }
 0x275   :  { %v2239_v56 = vmul.f32 %v2107_v50, %v28_v5  ;;  %v2287_v25 = vmul.f32 %v2155_v34, %v76_v26  ;;  %v1851_v61 = vsel %vm1703_vm5, %v4250_v41, %v3907_v24  ;;  %v1903_v50 = vsel %vm1703_vm5, %v4256_v38, %v3962_v27  ;;  %v49_v24 = vld [vmem:[#allocation2 + $0xb8] sm:$0xff]  ;;  %v48_v27 = vld [vmem:[#allocation2 + $0xb0] sm:$0xff] }
 0x276   :  { %2373 = vst.msk [vmem:[#allocation5 + $0x18] sm:$0xff] %vm2372_vm7, %v2240_v59  ;;  %2421 = vst.msk [vmem:[#allocation5 + $0x198] sm:$0xff] %vm2372_vm7, %v2288_v14  ;;  %v101_v41 = vld [vmem:[#allocation2 + $0x258] sm:$0xff]  ;;  %v100_v38 = vld [vmem:[#allocation2 + $0x250] sm:$0xff] }
 0x277   :  { %2371 = vst [vmem:[#allocation5 + $0x10] sm:$0xff] %v2239_v56  ;;  %2420 = vst [vmem:[#allocation5 + $0x190] sm:$0xff] %v2287_v25  ;;  %v1983_v49 = vpop.permute.xlu1 %1982  ;;  %v2031_v40 = vpop.permute.xlu0 %2030 }
 0x278   :  { %v2115_v31 = vsel %vm1971_vm6, %v1983_v49, %v1847_v46  ;;  %v2248_v5 = vmul.f32 %v1983_v49, %v37_v22  ;;  %v2163_v26 = vsel %vm1971_vm6, %v2031_v40, %v1895_v30  ;;  %v2296_v47 = vmul.f32 %v2031_v40, %v85_v13 }
 0x279   :  { %v2247_v21 = vmul.f32 %v2115_v31, %v36_v37  ;;  %v2295_v23 = vmul.f32 %v2163_v26, %v84_v52  ;;  %v1859_v52 = vsel %vm1703_vm5, %v4254_v1, %v3934_v33  ;;  %v1911_v46 = vsel %vm1703_vm5, %v4260_v18, %v3988_v48  ;;  %v57_v33 = vld [vmem:[#allocation2 + $0xf8] sm:$0xff]  ;;  %v56_v48 = vld [vmem:[#allocation2 + $0xf0] sm:$0xff] }
 0x27a   :  { %2381 = vst.msk [vmem:[#allocation5 + $0x58] sm:$0xff] %vm2372_vm7, %v2248_v5  ;;  %2429 = vst.msk [vmem:[#allocation5 + $0x1d8] sm:$0xff] %vm2372_vm7, %v2296_v47  ;;  %v109_v1 = vld [vmem:[#allocation2 + $0x298] sm:$0xff]  ;;  %v108_v18 = vld [vmem:[#allocation2 + $0x290] sm:$0xff] }
 0x27b   :  { %2380 = vst [vmem:[#allocation5 + $0x50] sm:$0xff] %v2247_v21  ;;  %2428 = vst [vmem:[#allocation5 + $0x1d0] sm:$0xff] %v2295_v23  ;;  %v1987_v59 = vpop.permute.xlu1 %1986  ;;  %v2039_v34 = vpop.permute.xlu0 %2038  ;;  %v1867_v23 = vsel %vm1703_vm5, %v4258_v20, %v3960_v51  ;;  %v65_v51 = vld [vmem:[#allocation2 + $0x138] sm:$0xff] }
 0x27c   :  { %v2119_v14 = vsel %vm1971_vm6, %v1987_v59, %v1851_v61  ;;  %v2252_v56 = vmul.f32 %v1987_v59, %v41_v19  ;;  %v2171_v25 = vsel %vm1971_vm6, %v2039_v34, %v1903_v50  ;;  %v2304_v22 = vmul.f32 %v2039_v34, %v93_v62  ;;  %v117_v20 = vld [vmem:[#allocation2 + $0x2d8] sm:$0xff] }
 0x27d   :  { %v2251_v13 = vmul.f32 %v2119_v14, %v40_v4  ;;  %v2303_v37 = vmul.f32 %v2171_v25, %v92_v60  ;;  %v1919_v19 = vsel %vm1703_vm5, %v4264_v39, %v4014_v45  ;;  %v64_v45 = vld [vmem:[#allocation2 + $0x130] sm:$0xff]  ;;  %v1927_v25 = vsel %vm1703_vm5, %v4268_v3, %v4040_v35 }
 0x27e   :  { %2385 = vst.msk [vmem:[#allocation5 + $0x78] sm:$0xff] %vm2372_vm7, %v2252_v56  ;;  %2437 = vst.msk [vmem:[#allocation5 + $0x218] sm:$0xff] %vm2372_vm7, %v2304_v22  ;;  %v116_v39 = vld [vmem:[#allocation2 + $0x2d0] sm:$0xff]  ;;  %v1875_v56 = vsel %vm1703_vm5, %v4262_v6, %v3986_v43  ;;  %v73_v43 = vld [vmem:[#allocation2 + $0x178] sm:$0xff] }
 0x27f   :  { %2384 = vst [vmem:[#allocation5 + $0x70] sm:$0xff] %v2251_v13  ;;  %2436 = vst [vmem:[#allocation5 + $0x210] sm:$0xff] %v2303_v37  ;;  %v1995_v30 = vpop.permute.xlu1 %1994  ;;  %v2047_v49 = vpop.permute.xlu0 %2046  ;;  %v125_v6 = vld [vmem:[#allocation2 + $0x318] sm:$0xff]  ;;  %v72_v35 = vld [vmem:[#allocation2 + $0x170] sm:$0xff] }
 0x280   :  { %v2127_v40 = vsel %vm1971_vm6, %v1995_v30, %v1859_v52  ;;  %v2260_v31 = vmul.f32 %v1995_v30, %v49_v24  ;;  %v2179_v5 = vsel %vm1971_vm6, %v2047_v49, %v1911_v46  ;;  %v2312_v26 = vmul.f32 %v2047_v49, %v101_v41  ;;  %v124_v3 = vld [vmem:[#allocation2 + $0x310] sm:$0xff] }
 0x281   :  { %v2259_v47 = vmul.f32 %v2127_v40, %v48_v27  ;;  %v2311_v21 = vmul.f32 %v2179_v5, %v100_v38  ;;  %v1883_v46 = vsel %vm1703_vm5, %v4266_v57, %v4012_v12  ;;  %v1935_v30 = vsel %vm1703_vm5, %v4272_v0, %v4066_v2  ;;  %v81_v12 = vld [vmem:[#allocation2 + $0x1b8] sm:$0xff]  ;;  %v80_v2 = vld [vmem:[#allocation2 + $0x1b0] sm:$0xff] }
 0x282   :  { %2393 = vst.msk [vmem:[#allocation5 + $0xb8] sm:$0xff] %vm2372_vm7, %v2260_v31  ;;  %2445 = vst.msk [vmem:[#allocation5 + $0x258] sm:$0xff] %vm2372_vm7, %v2312_v26  ;;  %v133_v57 = vld [vmem:[#allocation2 + $0x358] sm:$0xff]  ;;  %v132_v0 = vld [vmem:[#allocation2 + $0x350] sm:$0xff] }
 0x283   :  { %2392 = vst [vmem:[#allocation5 + $0xb0] sm:$0xff] %v2259_v47  ;;  %2444 = vst [vmem:[#allocation5 + $0x250] sm:$0xff] %v2311_v21  ;;  %v2003_v62 = vpop.permute.xlu1 %2002  ;;  %v2055_v4 = vpop.permute.xlu0 %2054 }
 0x284   :  { %v2135_v60 = vsel %vm1971_vm6, %v2003_v62, %v1867_v23  ;;  %v2268_v61 = vmul.f32 %v2003_v62, %v57_v33  ;;  %v2187_v50 = vsel %vm1971_vm6, %v2055_v4, %v1919_v19  ;;  %v2320_v59 = vmul.f32 %v2055_v4, %v109_v1 }
 0x285   :  { %v2267_v34 = vmul.f32 %v2135_v60, %v56_v48  ;;  %v2319_v14 = vmul.f32 %v2187_v50, %v108_v18  ;;  %v1891_v1 = vsel %vm1703_vm5, %v4270_v28, %v4038_v53  ;;  %v1943_v48 = vsel %vm1703_vm5, %v4276_v10, %v4092_v32  ;;  %v89_v53 = vld [vmem:[#allocation2 + $0x1f8] sm:$0xff]  ;;  %v88_v32 = vld [vmem:[#allocation2 + $0x1f0] sm:$0xff] }
 0x286   :  { %2401 = vst.msk [vmem:[#allocation5 + $0xf8] sm:$0xff] %vm2372_vm7, %v2268_v61  ;;  %2453 = vst.msk [vmem:[#allocation5 + $0x298] sm:$0xff] %vm2372_vm7, %v2320_v59  ;;  %v141_v28 = vld [vmem:[#allocation2 + $0x398] sm:$0xff]  ;;  %v140_v10 = vld [vmem:[#allocation2 + $0x390] sm:$0xff]  ;;  %v1899_v59 = vsel %vm1703_vm5, %v4274_v54, %v4064_v17 }
 0x287   :  { %2400 = vst [vmem:[#allocation5 + $0xf0] sm:$0xff] %v2267_v34  ;;  %2452 = vst [vmem:[#allocation5 + $0x290] sm:$0xff] %v2319_v14  ;;  %v2011_v22 = vpop.permute.xlu1 %2010  ;;  %v2063_v13 = vpop.permute.xlu0 %2062  ;;  %v1951_v34 = vsel %vm1703_vm5, %v4280_v8, %v4118_v58  ;;  %v97_v17 = vld [vmem:[#allocation2 + $0x238] sm:$0xff]  ;;  %v96_v58 = vld [vmem:[#allocation2 + $0x230] sm:$0xff] }
 0x288   :  { %v2143_v37 = vsel %vm1971_vm6, %v2011_v22, %v1875_v56  ;;  %v2276_v24 = vmul.f32 %v2011_v22, %v65_v51  ;;  %v2195_v41 = vsel %vm1971_vm6, %v2063_v13, %v1927_v25  ;;  %v2328_v27 = vmul.f32 %v2063_v13, %v117_v20  ;;  %v149_v54 = vld [vmem:[#allocation2 + $0x3d8] sm:$0xff]  ;;  %v148_v8 = vld [vmem:[#allocation2 + $0x3d0] sm:$0xff] }
 0x289   :  { %v2275_v38 = vmul.f32 %v2143_v37, %v64_v45  ;;  %v2327_v52 = vmul.f32 %v2195_v41, %v116_v39  ;;  %v1907_v13 = vsel %vm1703_vm5, %v4278_v7, %v4090_v16  ;;  %v1959_v37 = vsel %vm1703_vm5, %v4284_v63, %v4144_v29  ;;  %v105_v16 = vld [vmem:[#allocation2 + $0x278] sm:$0xff]  ;;  %v104_v29 = vld [vmem:[#allocation2 + $0x270] sm:$0xff] }
 0x28a   :  { %2409 = vst.msk [vmem:[#allocation5 + $0x138] sm:$0xff] %vm2372_vm7, %v2276_v24  ;;  %2461 = vst.msk [vmem:[#allocation5 + $0x2d8] sm:$0xff] %vm2372_vm7, %v2328_v27  ;;  %v157_v7 = vld [vmem:[#allocation2 + $0x418] sm:$0x3]  ;;  %v156_v63 = vld [vmem:[#allocation2 + $0x410] sm:$0x3] }
 0x28b   :  { %2408 = vst [vmem:[#allocation5 + $0x130] sm:$0xff] %v2275_v38  ;;  %2460 = vst [vmem:[#allocation5 + $0x2d0] sm:$0xff] %v2327_v52  ;;  %v2019_v49 = vpop.permute.xlu1 %2018  ;;  %v2071_v40 = vpop.permute.xlu0 %2070 }
 0x28c   :  { %v2151_v31 = vsel %vm1971_vm6, %v2019_v49, %v1883_v46  ;;  %v2284_v5 = vmul.f32 %v2019_v49, %v73_v43  ;;  %v2203_v26 = vsel %vm1971_vm6, %v2071_v40, %v1935_v30  ;;  %v2336_v47 = vmul.f32 %v2071_v40, %v125_v6  ;;  %v4868_v46 = vld [vmem:[#allocation17_spill] sm:$0xff] }
 0x28d   :  { %v2283_v21 = vmul.f32 %v2151_v31, %v72_v35  ;;  %v2335_v33 = vmul.f32 %v2203_v26, %v124_v3  ;;  %v1915_v3 = vsel %vm1703_vm5, %v4282_v42, %v4116_v15  ;;  %v4869_v30 = vld [vmem:[#allocation21_spill] sm:$0xff]  ;;  %v113_v42 = vld [vmem:[#allocation2 + $0x2b8] sm:$0xff] }
 0x28e   :  { %2417 = vst.msk [vmem:[#allocation5 + $0x178] sm:$0xff] %vm2372_vm7, %v2284_v5  ;;  %2469 = vst.msk [vmem:[#allocation5 + $0x318] sm:$0xff] %vm2372_vm7, %v2336_v47  ;;  %v1967_v49 = vsel %vm1703_vm5, %v4869_v30, %v4868_v46 }
 0x28f   :  { %2416 = vst [vmem:[#allocation5 + $0x170] sm:$0xff] %v2283_v21  ;;  %2468 = vst [vmem:[#allocation5 + $0x310] sm:$0xff] %v2335_v33  ;;  %v2027_v18 = vpop.permute.xlu1 %2026  ;;  %v2079_v23 = vpop.permute.xlu0 %2078 }
 0x290   :  { %v2159_v19 = vsel %vm1971_vm6, %v2027_v18, %v1891_v1  ;;  %v2292_v62 = vmul.f32 %v2027_v18, %v81_v12  ;;  %v2211_v4 = vsel %vm1971_vm6, %v2079_v23, %v1943_v48  ;;  %v2344_v60 = vmul.f32 %v2079_v23, %v133_v57  ;;  %v112_v12 = vld [vmem:[#allocation2 + $0x2b0] sm:$0xff] }
 0x291   :  { %v2291_v61 = vmul.f32 %v2159_v19, %v80_v2  ;;  %v2343_v50 = vmul.f32 %v2211_v4, %v132_v0  ;;  %v4870_v57 = vld [vmem:[#allocation50_spill] sm:$0xff]  ;;  %v4871_v2 = vld [vmem:[#allocation37_spill] sm:$0xff]  ;;  %v121_v19 = vld [vmem:[#allocation2 + $0x2f8] sm:$0xff] }
 0x292   :  { %2425 = vst.msk [vmem:[#allocation5 + $0x1b8] sm:$0xff] %vm2372_vm7, %v2292_v62  ;;  %2477 = vst.msk [vmem:[#allocation5 + $0x358] sm:$0xff] %vm2372_vm7, %v2344_v60  ;;  %v1923_v0 = vsel %vm1703_vm5, %v4871_v2, %v4870_v57  ;;  %v120_v62 = vld [vmem:[#allocation2 + $0x2f0] sm:$0xff]  ;;  %v4872_v4 = vld [vmem:[#allocation24_spill] sm:$0xff] }
 0x293   :  { %2424 = vst [vmem:[#allocation5 + $0x1b0] sm:$0xff] %v2291_v61  ;;  %2476 = vst [vmem:[#allocation5 + $0x350] sm:$0xff] %v2343_v50  ;;  %v2035_v14 = vpop.permute.xlu1 %2034  ;;  %v2087_v51 = vpop.permute.xlu0 %2086  ;;  %v4873_v60 = vld [vmem:[#allocation8_spill] sm:$0xff] }
 0x294   :  { %v2167_v20 = vsel %vm1971_vm6, %v2035_v14, %v1899_v59  ;;  %v2300_v45 = vmul.f32 %v2035_v14, %v89_v53  ;;  %v2219_v39 = vsel %vm1971_vm6, %v2087_v51, %v1951_v34  ;;  %v2352_v56 = vmul.f32 %v2087_v51, %v141_v28  ;;  %v128_v59 = vld [vmem:[#allocation2 + $0x330] sm:$0xff] }
 0x295   :  { %v2299_v25 = vmul.f32 %v2167_v20, %v88_v32  ;;  %v2351_v22 = vmul.f32 %v2219_v39, %v140_v10  ;;  %v1931_v61 = vsel %vm1703_vm5, %v4873_v60, %v4872_v4  ;;  %v129_v10 = vld [vmem:[#allocation2 + $0x338] sm:$0xff]  ;;  %v4874_v34 = vld [vmem:[#allocation26_spill] sm:$0xff] }
 0x296   :  { %2433 = vst.msk [vmem:[#allocation5 + $0x1f8] sm:$0xff] %vm2372_vm7, %v2300_v45  ;;  %2485 = vst.msk [vmem:[#allocation5 + $0x398] sm:$0xff] %vm2372_vm7, %v2352_v56  ;;  %v1939_v14 = vsel %vm1703_vm5, %v4304_v55, %v4874_v34  ;;  %v137_v56 = vld [vmem:[#allocation2 + $0x378] sm:$0xff] }
 0x297   :  { %2432 = vst [vmem:[#allocation5 + $0x1f0] sm:$0xff] %v2299_v25  ;;  %2484 = vst [vmem:[#allocation5 + $0x390] sm:$0xff] %v2351_v22  ;;  %v2043_v24 = vpop.permute.xlu1 %2042  ;;  %v2095_v41 = vpop.permute.xlu0 %2094  ;;  %v136_v25 = vld [vmem:[#allocation2 + $0x370] sm:$0xff] }
 0x298   :  { %v2175_v27 = vsel %vm1971_vm6, %v2043_v24, %v1907_v13  ;;  %v2308_v38 = vmul.f32 %v2043_v24, %v97_v17  ;;  %v2227_v52 = vsel %vm1971_vm6, %v2095_v41, %v1959_v37  ;;  %v2360_v43 = vmul.f32 %v2095_v41, %v149_v54  ;;  %v4875_v22 = vld [vmem:[#allocation34_spill] sm:$0xff]  ;;  %v145_v13 = vld [vmem:[#allocation2 + $0x3b8] sm:$0xff]  ;;  %v4876_v24 = vld [vmem:[#allocation20_spill] sm:$0xff] }
 0x299   :  { %v2307_v6 = vmul.f32 %v2175_v27, %v96_v58  ;;  %v2359_v35 = vmul.f32 %v2227_v52, %v148_v8  ;;  %v1947_v17 = vsel %vm1703_vm5, %v4313_v36, %v4875_v22  ;;  %v144_v37 = vld [vmem:[#allocation2 + $0x3b0] sm:$0xff]  ;;  %v1955_v41 = vsel %vm1703_vm5, %v4322_v44, %v4876_v24 }
 0x29a   :  { %2441 = vst.msk [vmem:[#allocation5 + $0x238] sm:$0xff] %vm2372_vm7, %v2308_v38  ;;  %2493 = vst.msk [vmem:[#allocation5 + $0x3d8] sm:$0xff] %vm2372_vm7, %v2360_v43  ;;  %v153_v43 = vld [vmem:[#allocation2 + $0x3f8] sm:$0xff] }
 0x29b   :  { %2440 = vst [vmem:[#allocation5 + $0x230] sm:$0xff] %v2307_v6  ;;  %2492 = vst [vmem:[#allocation5 + $0x3d0] sm:$0xff] %v2359_v35  ;;  %v2051_v40 = vpop.permute.xlu1 %2050  ;;  %v2103_v31 = vpop.permute.xlu0 %2102  ;;  %v152_v6 = vld [vmem:[#allocation2 + $0x3f0] sm:$0xff] }
 0x29c   :  { %v2183_v5 = vsel %vm1971_vm6, %v2051_v40, %v1915_v3  ;;  %v2316_v26 = vmul.f32 %v2051_v40, %v105_v16  ;;  %v2235_v47 = vsel %vm1971_vm6, %v2103_v31, %v1967_v49  ;;  %v2368_v21 = vmul.f32 %v2103_v31, %v157_v7  ;;  %v4877_v35 = vld [vmem:[#allocation54_spill] sm:$0xff] }
 0x29d   :  { %v2315_v33 = vmul.f32 %v2183_v5, %v104_v29  ;;  %v2367_v15 = vmul.f32 %v2235_v47, %v156_v63  ;;  %v1963_v16 = vsel %vm1703_vm5, %v4331_v11, %v4877_v35 }
 0x29e   :  { %2449 = vst.msk [vmem:[#allocation5 + $0x278] sm:$0xff] %vm2372_vm7, %v2316_v26 }
 0x29f   :  { %2502 = vst.msk [vmem:[#allocation5 + $0x418] sm:$0x3] %vm2501_vm8, %v2368_v21  ;;  %2448 = vst [vmem:[#allocation5 + $0x270] sm:$0xff] %v2315_v33  ;;  %v2059_v1 = vpop.permute.xlu1 %2058 }
 0x2a0   :  { %2500 = vst [vmem:[#allocation5 + $0x410] sm:$0x3] %v2367_v15  ;;  %v2191_v48 = vsel %vm1971_vm6, %v2059_v1, %v1923_v0  ;;  %v2324_v18 = vmul.f32 %v2059_v1, %v113_v42 }
 0x2a1   :  { %v2323_v23 = vmul.f32 %v2191_v48, %v112_v12 }
 0x2a2   :  { %2457 = vst.msk [vmem:[#allocation5 + $0x2b8] sm:$0xff] %vm2372_vm7, %v2324_v18 }
 0x2a3   :  { %2456 = vst [vmem:[#allocation5 + $0x2b0] sm:$0xff] %v2323_v23  ;;  %v2067_v50 = vpop.permute.xlu1 %2066 }
 0x2a4   :  { %v2199_v53 = vsel %vm1971_vm6, %v2067_v50, %v1931_v61  ;;  %v2332_v28 = vmul.f32 %v2067_v50, %v121_v19 }
 0x2a5   :  { %v2331_v32 = vmul.f32 %v2199_v53, %v120_v62 }
 0x2a6   :  { %2465 = vst.msk [vmem:[#allocation5 + $0x2f8] sm:$0xff] %vm2372_vm7, %v2332_v28 }
 0x2a7   :  { %2464 = vst [vmem:[#allocation5 + $0x2f0] sm:$0xff] %v2331_v32  ;;  %v2075_v51 = vpop.permute.xlu1 %2074 }
 0x2a8   :  { %v2207_v20 = vsel %vm1971_vm6, %v2075_v51, %v1939_v14  ;;  %v2340_v45 = vmul.f32 %v2075_v51, %v129_v10 }
 0x2a9   :  { %v2339_v39 = vmul.f32 %v2207_v20, %v128_v59 }
 0x2aa   :  { %2473 = vst.msk [vmem:[#allocation5 + $0x338] sm:$0xff] %vm2372_vm7, %v2340_v45 }
 0x2ab   :  { %2472 = vst [vmem:[#allocation5 + $0x330] sm:$0xff] %v2339_v39  ;;  %v2083_v54 = vpop.permute.xlu1 %2082 }
 0x2ac   :  { %v2215_v55 = vsel %vm1971_vm6, %v2083_v54, %v1947_v17  ;;  %v2348_v58 = vmul.f32 %v2083_v54, %v137_v56 }
 0x2ad   :  { %v2347_v8 = vmul.f32 %v2215_v55, %v136_v25 }
 0x2ae   :  { %2481 = vst.msk [vmem:[#allocation5 + $0x378] sm:$0xff] %vm2372_vm7, %v2348_v58 }
 0x2af   :  { %2480 = vst [vmem:[#allocation5 + $0x370] sm:$0xff] %v2347_v8  ;;  %v2091_v27 = vpop.permute.xlu1 %2090 }
 0x2b0   :  { %v2223_v36 = vsel %vm1971_vm6, %v2091_v27, %v1955_v41  ;;  %v2356_v38 = vmul.f32 %v2091_v27, %v145_v13 }
 0x2b1   :  { %v2355_v52 = vmul.f32 %v2223_v36, %v144_v37 }
 0x2b2   :  { %2489 = vst.msk [vmem:[#allocation5 + $0x3b8] sm:$0xff] %vm2372_vm7, %v2356_v38 }
 0x2b3   :  { %2488 = vst [vmem:[#allocation5 + $0x3b0] sm:$0xff] %v2355_v52  ;;  %v2099_v44 = vpop.permute.xlu1 %2098 }
 0x2b4   :  { %v2231_v7 = vsel %vm1971_vm6, %v2099_v44, %v1963_v16  ;;  %v2364_v29 = vmul.f32 %v2099_v44, %v153_v43 }
 0x2b5   :  { %v2363_v63 = vmul.f32 %v2231_v7, %v152_v6 }
 0x2b6   :  { %2497 = vst.msk [vmem:[#allocation5 + $0x3f8] sm:$0xff] %vm2372_vm7, %v2364_v29 }
 0x2b7   :  { %2496 = vst [vmem:[#allocation5 + $0x3f0] sm:$0xff] %v2363_v63 }
 0x2b8   :  { %2614 = shalt.err (!%p2611_p12)
}
 0x2b9   :  { %s2615_s24 = scalar_lea.hbm %s4552_s2, 16896 }
 0x2ba   :  { %p2616_p13 = scmp.ne.s32.totalorder %s4552_s2, %s2615_s24  ;;  %p2619_p0 = scmp.lt.u32.totalorder %s2615_s24, %s4552_s2 }
 0x2bc   :  { %p2621_p1 = pnand %p2619_p0, %p2616_p13 }
 0x2be   :  { %2624 = shalt.err (!%p2621_p1)
}
 0x2bf   :  { %2514 = dma.vmem_to_hbm [thread:$0]  %s2509_s18, 16896, %s4552_s2, [#allocation4], %s2630_s19, %s2630_s19, %s2631_s20  }
 0x2c0   :  { %2627 = dma.done.wait [#allocation4], 16896  }
 0x2c1   :  { %2628 = vsyncadd [#allocation4], 4294950400 }
 0x2c2   :  { %2518 = vsyncpa [#allocation3], 1 }
 0x2c3   :  { %2519 = vsyncpa [#allocation4], 1 }

</bundles_post_ra>
